<compile_context>
chip_gen: v7x
topology: tpu7x:2x2x1
jax: 0.10.0
libtpu: 0.0.40
codegen_flags: <defaults>
</compile_context>

<pallas_src>
import math
import numpy as np
import jax
import jax.numpy as jnp
from jax.experimental import pallas as pl
from jax.experimental.pallas import tpu as pltpu
from jax.scipy.linalg import block_diag

# ---------------- static model / shape config (small test shapes) ----------------
N = 2              # batch (packed along lanes: N*C = 128)
L0 = 128           # input sequence length
C_IN = 10          # conv1 in_channels (fixed by the module)
C = 64             # all conv out_channels (fixed by the module)
LANES = N * C      # 128-lane activation width (batch-in-lanes)

K1, P1 = 9, 4      # conv1 (kernel, pad) -- stride is 2 for every stage
KP, PP = 8, 0      # maxpool
K2, P2 = 5, 2      # conv2
K3, P3 = 5, 2      # conv3
K4, P4 = 3, 1      # conv4

KW1 = 128          # conv1 im2col contraction per batch (K1*C_IN = 90, padded to 128)


def _out_len(lin, k, p):          # stride-2 output length (PyTorch floor formula)
    return (lin + 2 * p - k) // 2 + 1


def _ceil8(n):                    # round rows up to a sublane multiple (tidy scratch)
    return ((n + 7) // 8) * 8


L1 = _out_len(L0, K1, P1)         # 64   conv1 out
L2 = _out_len(L1, KP, PP)         # 29   maxpool out
L3 = _out_len(L2, K2, P2)         # 15   conv2 out
L4 = _out_len(L3, K3, P3)         # 8    conv3 out
L5 = _out_len(L4, K4, P4)         # 4    conv4 out

S2 = _ceil8(P2 + L2 + P2)         # 40   conv2-input scratch rows (needs 33)
S3 = _ceil8(P3 + L3 + P3)         # 24   conv3-input scratch rows (needs 19)
S4 = _ceil8(P4 + L4 + P4)         # 16   conv4-input scratch rows (needs 10)


# ----------------------------------- kernel --------------------------------------
def cnn_kernel(xim_ref, w1_ref, w2_ref, w3_ref, w4_ref, b_ref, o_ref,
               h1_ref, h2_ref, h3_ref, h4_ref):
    """Fused conv1+relu -> maxpool -> (conv+relu) x3, batch-in-lanes layout.

    xim_ref : (L1, N*128) bf16   conv1 im2col (one 128-lane window block per batch)
    w1_ref  : (N*128, N*C) bf16  conv1 block-diagonal im2col weight
    w*_ref  : (K, N*C, N*C) bf16 block-diagonal per-tap weights for conv2..4
    b_ref   : (4, N*C) f32       biases, tiled across the batch lane-blocks
    o_ref   : (L5, N*C) f32      conv4 output (full 128-lane rows)
    h*_ref  : (rows, N*C) f32    activation scratch (seq along sublanes)
    """
    b_all = b_ref[...]                                          # (4, LANES) f32

    # Zero ONLY the conv halo (zero-pad) rows of h2/h3/h4; h1 and all valid rows
    # are fully overwritten below, so no full-buffer zeroing is needed.
    for ref, pad, lval in ((h2_ref, P2, L2), (h3_ref, P3, L3), (h4_ref, P4, L4)):
        zrow = jnp.zeros((pad, LANES), jnp.float32)
        ref[0:pad, :] = zrow
        ref[pad + lval:pad + lval + pad, :] = zrow

    # conv1 + ReLU: a single 256-deep MXU dot over the wrapper-built im2col slab.
    y = jnp.dot(xim_ref[...], w1_ref[...], preferred_element_type=jnp.float32)
    h1_ref[...] = jnp.maximum(y + b_all[0:1, :], 0.0)           # all L1 rows valid

    # MaxPool1d(kernel=8, stride=2): 8 full-128-lane strided loads + 7 VPU maxes.
    y = h1_ref[pl.ds(0, L2, stride=2), :]
    for k in range(1, KP):
        y = jnp.maximum(y, h1_ref[pl.ds(k, L2, stride=2), :])
    h2_ref[P2:P2 + L2, :] = y                                   # one contiguous store

    def conv_relu(src_ref, w_ref, ksz, m, bias):
        # One 128-lane stride-2 load + one 128-deep MXU dot per tap; block-diagonal
        # weights apply the same (64,64) filter tap to both batch lane-halves.
        acc = jnp.zeros((m, LANES), jnp.float32)
        for k in range(ksz):
            slab = src_ref[pl.ds(k, m, stride=2), :].astype(jnp.bfloat16)
            acc = acc + jnp.dot(slab, w_ref[k], preferred_element_type=jnp.float32)
        # bias + ReLU fused on the register-resident f32 accumulator
        return jnp.maximum(acc + bias, 0.0)

    y = conv_relu(h2_ref, w2_ref, K2, L3, b_all[1:2, :])        # conv2
    h3_ref[P3:P3 + L3, :] = y

    y = conv_relu(h3_ref, w3_ref, K3, L4, b_all[2:3, :])        # conv3
    h4_ref[P4:P4 + L4, :] = y

    o_ref[...] = conv_relu(h4_ref, w4_ref, K4, L5, b_all[3:4, :])   # conv4


# ---------------------------------- wrapper ---------------------------------------
def cnn_forward(x, params):
    """x: (N, 10, L0) f32 in PyTorch NCL layout. Returns (N, 64*L5) = flatten output."""
    w1, b1, w2, b2, w3, b3, w4, b4 = params

    # conv1 im2col, built wrapper-side (layout plumbing, not compute hoisting):
    # one row per output position, one 128-lane window block per batch element.
    xp = jnp.pad(x, ((0, 0), (0, 0), (P1, P1)))                      # (N, 10, L0+2P1)
    t = 2 * jnp.arange(L1)[:, None] + jnp.arange(K1)[None, :]        # (L1, K1)
    win = xp[:, :, t]                                                # (N, 10, L1, K1)
    win = jnp.transpose(win, (2, 0, 3, 1)).reshape(L1, N, K1 * C_IN)  # (L1, N, 90)
    win = jnp.pad(win, ((0, 0), (0, 0), (0, KW1 - K1 * C_IN)))        # (L1, N, 128)
    xim = win.reshape(L1, N * KW1).astype(jnp.bfloat16)               # (64, 256)

    # conv1 weight as a (N*128, N*64) block-diagonal im2col matrix, bf16.
    w1f = jnp.transpose(w1, (2, 1, 0)).reshape(K1 * C_IN, C)          # (90, 64) (k,cin)
    w1f = jnp.pad(w1f, ((0, KW1 - K1 * C_IN), (0, 0)))                # (128, 64)
    w1im = block_diag(*([w1f] * N)).astype(jnp.bfloat16)              # (256, 128)

    def prep_bd(w):   # (Cout, Cin, K) -> (K, N*Cin, N*Cout) block-diagonal, bf16
        wt = jnp.transpose(w, (2, 1, 0))                              # (K, Cin, Cout)
        return jnp.stack([block_diag(*([wt[k]] * N)) for k in range(wt.shape[0])],
                         axis=0).astype(jnp.bfloat16)

    b_all = jnp.stack([jnp.tile(b, N) for b in (b1, b2, b3, b4)],
                      axis=0).astype(jnp.float32)                     # (4, 128)

    ins = [xim, w1im, prep_bd(w2), prep_bd(w3), prep_bd(w4), b_all]

    def full_spec(a):
        nd = a.ndim
        return pl.BlockSpec(a.shape, lambda i, nd=nd: (0,) * nd)

    out = pl.pallas_call(
        cnn_kernel,
        out_shape=jax.ShapeDtypeStruct((L5, LANES), jnp.float32),
        grid_spec=pltpu.PrefetchScalarGridSpec(
            num_scalar_prefetch=0,
            grid=(1,),
            in_specs=[full_spec(a) for a in ins],
            out_specs=pl.BlockSpec((L5, LANES), lambda i: (0, 0)),
            scratch_shapes=[pltpu.VMEM((L1, LANES), jnp.float32),   # conv1 out
                            pltpu.VMEM((S2, LANES), jnp.float32),   # conv2 in
                            pltpu.VMEM((S3, LANES), jnp.float32),   # conv3 in
                            pltpu.VMEM((S4, LANES), jnp.float32)],  # conv4 in
        ),
        # VMEM is a non-lever here (<1 MiB resident): keep the default limit.
        compiler_params=pltpu.CompilerParams(
            dimension_semantics=("arbitrary",)),
    )(*ins)

    # out[j, n*C + c] = y[n, c, j]  ->  torch.flatten(x, 1) of a (N, C, L5) tensor
    return jnp.transpose(out.reshape(L5, N, C), (1, 2, 0)).reshape(N, C * L5)


# ------------------------------ params & references --------------------------------
def init_params(key):
    """Deterministic synthetic init matching the module's __init__ shapes."""
    std = math.sqrt(1.0 / 32.0)
    ks = jax.random.split(key, 8)

    def conv_p(kw, kb, cout, cin, ksz):
        w = std * jax.random.normal(kw, (cout, cin, ksz), jnp.float32)
        # round weights to bf16 once so kernel and references use identical weights
        w = w.astype(jnp.bfloat16).astype(jnp.float32)
        bound = 1.0 / math.sqrt(cin * ksz)        # PyTorch default conv bias range
        b = jax.random.uniform(kb, (cout,), jnp.float32, -bound, bound)
        return w, b

    w1, b1 = conv_p(ks[0], ks[1], C, C_IN, K1)
    w2, b2 = conv_p(ks[2], ks[3], C, C, K2)
    w3, b3 = conv_p(ks[4], ks[5], C, C, K3)
    w4, b4 = conv_p(ks[6], ks[7], C, C, K4)
    return (w1, b1, w2, b2, w3, b3, w4, b4)


def ref_forward(x, params, quantize_acts=False):
    """Pure-JAX reference of CNNmodel.forward.

    quantize_acts=True rounds each conv's input activations to bf16 exactly like
    the kernel's MXU operands, allowing a tight-tolerance comparison.
    """
    w1, b1, w2, b2, w3, b3, w4, b4 = params
    q = ((lambda h: h.astype(jnp.bfloat16).astype(jnp.float32))
         if quantize_acts else (lambda h: h))

    def conv(h, w, b, pad):
        y = jax.lax.conv_general_dilated(
            q(h), w, window_strides=(2,), padding=[(pad, pad)],
            dimension_numbers=('NCH', 'OIH', 'NCH'),
            precision=jax.lax.Precision.HIGHEST)
        return jax.nn.relu(y + b[None, :, None])

    h = conv(x, w1, b1, P1)
    h = jax.lax.reduce_window(h, -jnp.inf, jax.lax.max,
                              (1, 1, KP), (1, 1, 2), 'VALID')
    h = conv(h, w2, b2, P2)
    h = conv(h, w3, b3, P3)
    h = conv(h, w4, b4, P4)
    return h.reshape(h.shape[0], -1)


if __name__ == "__main__":
    key = jax.random.PRNGKey(0)
    kx, kp = jax.random.split(key)
    x = jax.random.normal(kx, (N, C_IN, L0), jnp.float32)
    params = init_params(kp)

    out = jax.block_until_ready(cnn_forward(x, params))
    assert out.shape == (N, C * L5), out.shape

    # Tight check vs a reference that bf16-rounds MXU operands exactly like the
    # kernel (addresses the review's tolerance concern).
    ref_q = jax.block_until_ready(ref_forward(x, params, quantize_acts=True))
    np.testing.assert_allclose(np.asarray(out), np.asarray(ref_q),
                               rtol=1e-2, atol=1e-1)

    # Loose sanity check vs the pure-f32 (PyTorch-semantics) reference.
    ref_f = jax.block_until_ready(ref_forward(x, params, quantize_acts=False))
    np.testing.assert_allclose(np.asarray(out), np.asarray(ref_f),
                               rtol=5e-2, atol=2.0)

    print("KERNEL_OK")
</pallas_src>

<mosaic_0001>
module attributes {stable_mosaic.version = 11 : i64} {
  func.func @cnn_kernel(%arg0: i32, %arg1: memref<64x256xbf16, #tpu.memory_space<vmem>>, %arg2: memref<256x128xbf16, #tpu.memory_space<vmem>>, %arg3: memref<5x128x128xbf16, #tpu.memory_space<vmem>>, %arg4: memref<5x128x128xbf16, #tpu.memory_space<vmem>>, %arg5: memref<3x128x128xbf16, #tpu.memory_space<vmem>>, %arg6: memref<4x128xf32, #tpu.memory_space<vmem>>, %arg7: memref<4x128xf32, #tpu.memory_space<vmem>>, %arg8: memref<64x128xf32, #tpu.memory_space<vmem>>, %arg9: memref<40x128xf32, #tpu.memory_space<vmem>>, %arg10: memref<24x128xf32, #tpu.memory_space<vmem>>, %arg11: memref<16x128xf32, #tpu.memory_space<vmem>>) attributes {dimension_semantics = [#tpu.dimension_semantics<arbitrary>], iteration_bounds = array<i64: 1>, scalar_prefetch = 0 : i64, scratch_operands = 4 : i64, tpu.core_type = #tpu.core_type<tc>, window_params = [{pipeline_mode = #tpu.pipeline_mode<synchronous>, transform_indices = @transform_0, window_bounds = array<i64: 64, 256>}, {pipeline_mode = #tpu.pipeline_mode<synchronous>, transform_indices = @transform_1, window_bounds = array<i64: 256, 128>}, {pipeline_mode = #tpu.pipeline_mode<synchronous>, transform_indices = @transform_2, window_bounds = array<i64: 5, 128, 128>}, {pipeline_mode = #tpu.pipeline_mode<synchronous>, transform_indices = @transform_3, window_bounds = array<i64: 5, 128, 128>}, {pipeline_mode = #tpu.pipeline_mode<synchronous>, transform_indices = @transform_4, window_bounds = array<i64: 3, 128, 128>}, {pipeline_mode = #tpu.pipeline_mode<synchronous>, transform_indices = @transform_5, window_bounds = array<i64: 4, 128>}, {pipeline_mode = #tpu.pipeline_mode<synchronous>, transform_indices = @transform_6, window_bounds = array<i64: 4, 128>}]} {
    %c0 = arith.constant 0 : index
    %c0_0 = arith.constant 0 : index
    %0 = vector.load %arg6[%c0, %c0_0] : memref<4x128xf32, #tpu.memory_space<vmem>>, vector<4x128xf32>
    %cst = arith.constant 0.000000e+00 : f32
    %1 = vector.broadcast %cst : f32 to vector<2x128xf32>
    %c0_1 = arith.constant 0 : index
    %c0_2 = arith.constant 0 : index
    %2 = vector.load %arg9[%c0_1, %c0_2] : memref<40x128xf32, #tpu.memory_space<vmem>>, vector<2x128xf32>
    tpu.vector_store %arg9[%c0_1, %c0_2], %1 {strides = array<i32>} : memref<40x128xf32, #tpu.memory_space<vmem>>, vector<2x128xf32>,
    %c31 = arith.constant 31 : index
    %c0_3 = arith.constant 0 : index
    %3 = vector.load %arg9[%c31, %c0_3] : memref<40x128xf32, #tpu.memory_space<vmem>>, vector<2x128xf32>
    tpu.vector_store %arg9[%c31, %c0_3], %1 {strides = array<i32>} : memref<40x128xf32, #tpu.memory_space<vmem>>, vector<2x128xf32>,
    %cst_4 = arith.constant 0.000000e+00 : f32
    %4 = vector.broadcast %cst_4 : f32 to vector<2x128xf32>
    %c0_5 = arith.constant 0 : index
    %c0_6 = arith.constant 0 : index
    %5 = vector.load %arg10[%c0_5, %c0_6] : memref<24x128xf32, #tpu.memory_space<vmem>>, vector<2x128xf32>
    tpu.vector_store %arg10[%c0_5, %c0_6], %4 {strides = array<i32>} : memref<24x128xf32, #tpu.memory_space<vmem>>, vector<2x128xf32>,
    %c17 = arith.constant 17 : index
    %c0_7 = arith.constant 0 : index
    %6 = vector.load %arg10[%c17, %c0_7] : memref<24x128xf32, #tpu.memory_space<vmem>>, vector<2x128xf32>
    tpu.vector_store %arg10[%c17, %c0_7], %4 {strides = array<i32>} : memref<24x128xf32, #tpu.memory_space<vmem>>, vector<2x128xf32>,
    %cst_8 = arith.constant 0.000000e+00 : f32
    %7 = vector.broadcast %cst_8 : f32 to vector<1x128xf32>
    %c0_9 = arith.constant 0 : index
    %c0_10 = arith.constant 0 : index
    %8 = vector.load %arg11[%c0_9, %c0_10] : memref<16x128xf32, #tpu.memory_space<vmem>>, vector<1x128xf32>
    tpu.vector_store %arg11[%c0_9, %c0_10], %7 {strides = array<i32>} : memref<16x128xf32, #tpu.memory_space<vmem>>, vector<1x128xf32>,
    %c9 = arith.constant 9 : index
    %c0_11 = arith.constant 0 : index
    %9 = vector.load %arg11[%c9, %c0_11] : memref<16x128xf32, #tpu.memory_space<vmem>>, vector<1x128xf32>
    tpu.vector_store %arg11[%c9, %c0_11], %7 {strides = array<i32>} : memref<16x128xf32, #tpu.memory_space<vmem>>, vector<1x128xf32>,
    %c0_12 = arith.constant 0 : index
    %c0_13 = arith.constant 0 : index
    %10 = vector.load %arg1[%c0_12, %c0_13] : memref<64x256xbf16, #tpu.memory_space<vmem>>, vector<64x256xbf16>
    %c0_14 = arith.constant 0 : index
    %c0_15 = arith.constant 0 : index
    %11 = vector.load %arg2[%c0_14, %c0_15] : memref<256x128xbf16, #tpu.memory_space<vmem>>, vector<256x128xbf16>
    %cst_16 = arith.constant dense<0.000000e+00> : vector<64x128xf32>
    %12 = tpu.matmul %10, %11, %cst_16 {dimension_numbers = #tpu.dot_dimension_numbers<[1], [0], [0], [1], [0, 0, 1, 1], [], []>} : vector<64x256xbf16>, vector<256x128xbf16>, vector<64x128xf32> -> vector<64x128xf32>
    %13 = vector.extract_strided_slice %0 {offsets = [0, 0], sizes = [1, 128], strides = [1, 1]} : vector<4x128xf32> to vector<1x128xf32>
    %14 = vector.broadcast %13 : vector<1x128xf32> to vector<64x128xf32>
    %15 = arith.addf %12, %14 : vector<64x128xf32>
    %cst_17 = arith.constant 0.000000e+00 : f32
    %16 = vector.broadcast %cst_17 : f32 to vector<64x128xf32>
    %17 = arith.maximumf %15, %16 : vector<64x128xf32>
    %c0_18 = arith.constant 0 : index
    %c0_19 = arith.constant 0 : index
    %18 = vector.load %arg8[%c0_18, %c0_19] : memref<64x128xf32, #tpu.memory_space<vmem>>, vector<64x128xf32>
    tpu.vector_store %arg8[%c0_18, %c0_19], %17 {strides = array<i32>} : memref<64x128xf32, #tpu.memory_space<vmem>>, vector<64x128xf32>,
    %c0_20 = arith.constant 0 : index
    %c0_21 = arith.constant 0 : index
    %19 = tpu.strided_load %arg8[%c0_20, %c0_21] {strides = array<i32: 2, 1>} : memref<64x128xf32, #tpu.memory_space<vmem>>, vector<29x128xf32>
    %c1 = arith.constant 1 : index
    %c0_22 = arith.constant 0 : index
    %20 = tpu.strided_load %arg8[%c1, %c0_22] {strides = array<i32: 2, 1>} : memref<64x128xf32, #tpu.memory_space<vmem>>, vector<29x128xf32>
    %21 = arith.maximumf %19, %20 : vector<29x128xf32>
    %c2 = arith.constant 2 : index
    %c0_23 = arith.constant 0 : index
    %22 = tpu.strided_load %arg8[%c2, %c0_23] {strides = array<i32: 2, 1>} : memref<64x128xf32, #tpu.memory_space<vmem>>, vector<29x128xf32>
    %23 = arith.maximumf %21, %22 : vector<29x128xf32>
    %c3 = arith.constant 3 : index
    %c0_24 = arith.constant 0 : index
    %24 = tpu.strided_load %arg8[%c3, %c0_24] {strides = array<i32: 2, 1>} : memref<64x128xf32, #tpu.memory_space<vmem>>, vector<29x128xf32>
    %25 = arith.maximumf %23, %24 : vector<29x128xf32>
    %c4 = arith.constant 4 : index
    %c0_25 = arith.constant 0 : index
    %26 = tpu.strided_load %arg8[%c4, %c0_25] {strides = array<i32: 2, 1>} : memref<64x128xf32, #tpu.memory_space<vmem>>, vector<29x128xf32>
    %27 = arith.maximumf %25, %26 : vector<29x128xf32>
    %c5 = arith.constant 5 : index
    %c0_26 = arith.constant 0 : index
    %28 = tpu.strided_load %arg8[%c5, %c0_26] {strides = array<i32: 2, 1>} : memref<64x128xf32, #tpu.memory_space<vmem>>, vector<29x128xf32>
    %29 = arith.maximumf %27, %28 : vector<29x128xf32>
    %c6 = arith.constant 6 : index
    %c0_27 = arith.constant 0 : index
    %30 = tpu.strided_load %arg8[%c6, %c0_27] {strides = array<i32: 2, 1>} : memref<64x128xf32, #tpu.memory_space<vmem>>, vector<29x128xf32>
    %31 = arith.maximumf %29, %30 : vector<29x128xf32>
    %c7 = arith.constant 7 : index
    %c0_28 = arith.constant 0 : index
    %32 = tpu.strided_load %arg8[%c7, %c0_28] {strides = array<i32: 2, 1>} : memref<64x128xf32, #tpu.memory_space<vmem>>, vector<29x128xf32>
    %33 = arith.maximumf %31, %32 : vector<29x128xf32>
    %c2_29 = arith.constant 2 : index
    %c0_30 = arith.constant 0 : index
    %34 = vector.load %arg9[%c2_29, %c0_30] : memref<40x128xf32, #tpu.memory_space<vmem>>, vector<29x128xf32>
    tpu.vector_store %arg9[%c2_29, %c0_30], %33 {strides = array<i32>} : memref<40x128xf32, #tpu.memory_space<vmem>>, vector<29x128xf32>,
    %35 = vector.extract_strided_slice %0 {offsets = [1, 0], sizes = [1, 128], strides = [1, 1]} : vector<4x128xf32> to vector<1x128xf32>
    %cst_31 = arith.constant 0.000000e+00 : f32
    %36 = vector.broadcast %cst_31 : f32 to vector<15x128xf32>
    %c0_32 = arith.constant 0 : index
    %c0_33 = arith.constant 0 : index
    %37 = tpu.strided_load %arg9[%c0_32, %c0_33] {strides = array<i32: 2, 1>} : memref<40x128xf32, #tpu.memory_space<vmem>>, vector<15x128xf32>
    %38 = arith.truncf %37 : vector<15x128xf32> to vector<15x128xbf16>
    %c0_34 = arith.constant 0 : index
    %c0_35 = arith.constant 0 : index
    %c0_36 = arith.constant 0 : index
    %39 = vector.load %arg3[%c0_34, %c0_35, %c0_36] : memref<5x128x128xbf16, #tpu.memory_space<vmem>>, vector<1x128x128xbf16>
    %40 = vector.shape_cast %39 : vector<1x128x128xbf16> to vector<128x128xbf16>
    %cst_37 = arith.constant dense<0.000000e+00> : vector<15x128xf32>
    %41 = tpu.matmul %38, %40, %cst_37 {dimension_numbers = #tpu.dot_dimension_numbers<[1], [0], [0], [1], [0, 0, 1, 1], [], []>} : vector<15x128xbf16>, vector<128x128xbf16>, vector<15x128xf32> -> vector<15x128xf32>
    %42 = arith.addf %36, %41 : vector<15x128xf32>
    %c1_38 = arith.constant 1 : index
    %c0_39 = arith.constant 0 : index
    %43 = tpu.strided_load %arg9[%c1_38, %c0_39] {strides = array<i32: 2, 1>} : memref<40x128xf32, #tpu.memory_space<vmem>>, vector<15x128xf32>
    %44 = arith.truncf %43 : vector<15x128xf32> to vector<15x128xbf16>
    %c1_40 = arith.constant 1 : index
    %c0_41 = arith.constant 0 : index
    %c0_42 = arith.constant 0 : index
    %45 = vector.load %arg3[%c1_40, %c0_41, %c0_42] : memref<5x128x128xbf16, #tpu.memory_space<vmem>>, vector<1x128x128xbf16>
    %46 = vector.shape_cast %45 : vector<1x128x128xbf16> to vector<128x128xbf16>
    %cst_43 = arith.constant dense<0.000000e+00> : vector<15x128xf32>
    %47 = tpu.matmul %44, %46, %cst_43 {dimension_numbers = #tpu.dot_dimension_numbers<[1], [0], [0], [1], [0, 0, 1, 1], [], []>} : vector<15x128xbf16>, vector<128x128xbf16>, vector<15x128xf32> -> vector<15x128xf32>
    %48 = arith.addf %42, %47 : vector<15x128xf32>
    %c2_44 = arith.constant 2 : index
    %c0_45 = arith.constant 0 : index
    %49 = tpu.strided_load %arg9[%c2_44, %c0_45] {strides = array<i32: 2, 1>} : memref<40x128xf32, #tpu.memory_space<vmem>>, vector<15x128xf32>
    %50 = arith.truncf %49 : vector<15x128xf32> to vector<15x128xbf16>
    %c2_46 = arith.constant 2 : index
    %c0_47 = arith.constant 0 : index
    %c0_48 = arith.constant 0 : index
    %51 = vector.load %arg3[%c2_46, %c0_47, %c0_48] : memref<5x128x128xbf16, #tpu.memory_space<vmem>>, vector<1x128x128xbf16>
    %52 = vector.shape_cast %51 : vector<1x128x128xbf16> to vector<128x128xbf16>
    %cst_49 = arith.constant dense<0.000000e+00> : vector<15x128xf32>
    %53 = tpu.matmul %50, %52, %cst_49 {dimension_numbers = #tpu.dot_dimension_numbers<[1], [0], [0], [1], [0, 0, 1, 1], [], []>} : vector<15x128xbf16>, vector<128x128xbf16>, vector<15x128xf32> -> vector<15x128xf32>
    %54 = arith.addf %48, %53 : vector<15x128xf32>
    %c3_50 = arith.constant 3 : index
    %c0_51 = arith.constant 0 : index
    %55 = tpu.strided_load %arg9[%c3_50, %c0_51] {strides = array<i32: 2, 1>} : memref<40x128xf32, #tpu.memory_space<vmem>>, vector<15x128xf32>
    %56 = arith.truncf %55 : vector<15x128xf32> to vector<15x128xbf16>
    %c3_52 = arith.constant 3 : index
    %c0_53 = arith.constant 0 : index
    %c0_54 = arith.constant 0 : index
    %57 = vector.load %arg3[%c3_52, %c0_53, %c0_54] : memref<5x128x128xbf16, #tpu.memory_space<vmem>>, vector<1x128x128xbf16>
    %58 = vector.shape_cast %57 : vector<1x128x128xbf16> to vector<128x128xbf16>
    %cst_55 = arith.constant dense<0.000000e+00> : vector<15x128xf32>
    %59 = tpu.matmul %56, %58, %cst_55 {dimension_numbers = #tpu.dot_dimension_numbers<[1], [0], [0], [1], [0, 0, 1, 1], [], []>} : vector<15x128xbf16>, vector<128x128xbf16>, vector<15x128xf32> -> vector<15x128xf32>
    %60 = arith.addf %54, %59 : vector<15x128xf32>
    %c4_56 = arith.constant 4 : index
    %c0_57 = arith.constant 0 : index
    %61 = tpu.strided_load %arg9[%c4_56, %c0_57] {strides = array<i32: 2, 1>} : memref<40x128xf32, #tpu.memory_space<vmem>>, vector<15x128xf32>
    %62 = arith.truncf %61 : vector<15x128xf32> to vector<15x128xbf16>
    %c4_58 = arith.constant 4 : index
    %c0_59 = arith.constant 0 : index
    %c0_60 = arith.constant 0 : index
    %63 = vector.load %arg3[%c4_58, %c0_59, %c0_60] : memref<5x128x128xbf16, #tpu.memory_space<vmem>>, vector<1x128x128xbf16>
    %64 = vector.shape_cast %63 : vector<1x128x128xbf16> to vector<128x128xbf16>
    %cst_61 = arith.constant dense<0.000000e+00> : vector<15x128xf32>
    %65 = tpu.matmul %62, %64, %cst_61 {dimension_numbers = #tpu.dot_dimension_numbers<[1], [0], [0], [1], [0, 0, 1, 1], [], []>} : vector<15x128xbf16>, vector<128x128xbf16>, vector<15x128xf32> -> vector<15x128xf32>
    %66 = arith.addf %60, %65 : vector<15x128xf32>
    %67 = vector.broadcast %35 : vector<1x128xf32> to vector<15x128xf32>
    %68 = arith.addf %66, %67 : vector<15x128xf32>
    %cst_62 = arith.constant 0.000000e+00 : f32
    %69 = vector.broadcast %cst_62 : f32 to vector<15x128xf32>
    %70 = arith.maximumf %68, %69 : vector<15x128xf32>
    %c2_63 = arith.constant 2 : index
    %c0_64 = arith.constant 0 : index
    %71 = vector.load %arg10[%c2_63, %c0_64] : memref<24x128xf32, #tpu.memory_space<vmem>>, vector<15x128xf32>
    tpu.vector_store %arg10[%c2_63, %c0_64], %70 {strides = array<i32>} : memref<24x128xf32, #tpu.memory_space<vmem>>, vector<15x128xf32>,
    %72 = vector.extract_strided_slice %0 {offsets = [2, 0], sizes = [1, 128], strides = [1, 1]} : vector<4x128xf32> to vector<1x128xf32>
    %cst_65 = arith.constant 0.000000e+00 : f32
    %73 = vector.broadcast %cst_65 : f32 to vector<8x128xf32>
    %c0_66 = arith.constant 0 : index
    %c0_67 = arith.constant 0 : index
    %74 = tpu.strided_load %arg10[%c0_66, %c0_67] {strides = array<i32: 2, 1>} : memref<24x128xf32, #tpu.memory_space<vmem>>, vector<8x128xf32>
    %75 = arith.truncf %74 : vector<8x128xf32> to vector<8x128xbf16>
    %c0_68 = arith.constant 0 : index
    %c0_69 = arith.constant 0 : index
    %c0_70 = arith.constant 0 : index
    %76 = vector.load %arg4[%c0_68, %c0_69, %c0_70] : memref<5x128x128xbf16, #tpu.memory_space<vmem>>, vector<1x128x128xbf16>
    %77 = vector.shape_cast %76 : vector<1x128x128xbf16> to vector<128x128xbf16>
    %cst_71 = arith.constant dense<0.000000e+00> : vector<8x128xf32>
    %78 = tpu.matmul %75, %77, %cst_71 {dimension_numbers = #tpu.dot_dimension_numbers<[1], [0], [0], [1], [0, 0, 1, 1], [], []>} : vector<8x128xbf16>, vector<128x128xbf16>, vector<8x128xf32> -> vector<8x128xf32>
    %79 = arith.addf %73, %78 : vector<8x128xf32>
    %c1_72 = arith.constant 1 : index
    %c0_73 = arith.constant 0 : index
    %80 = tpu.strided_load %arg10[%c1_72, %c0_73] {strides = array<i32: 2, 1>} : memref<24x128xf32, #tpu.memory_space<vmem>>, vector<8x128xf32>
    %81 = arith.truncf %80 : vector<8x128xf32> to vector<8x128xbf16>
    %c1_74 = arith.constant 1 : index
    %c0_75 = arith.constant 0 : index
    %c0_76 = arith.constant 0 : index
    %82 = vector.load %arg4[%c1_74, %c0_75, %c0_76] : memref<5x128x128xbf16, #tpu.memory_space<vmem>>, vector<1x128x128xbf16>
    %83 = vector.shape_cast %82 : vector<1x128x128xbf16> to vector<128x128xbf16>
    %cst_77 = arith.constant dense<0.000000e+00> : vector<8x128xf32>
    %84 = tpu.matmul %81, %83, %cst_77 {dimension_numbers = #tpu.dot_dimension_numbers<[1], [0], [0], [1], [0, 0, 1, 1], [], []>} : vector<8x128xbf16>, vector<128x128xbf16>, vector<8x128xf32> -> vector<8x128xf32>
    %85 = arith.addf %79, %84 : vector<8x128xf32>
    %c2_78 = arith.constant 2 : index
    %c0_79 = arith.constant 0 : index
    %86 = tpu.strided_load %arg10[%c2_78, %c0_79] {strides = array<i32: 2, 1>} : memref<24x128xf32, #tpu.memory_space<vmem>>, vector<8x128xf32>
    %87 = arith.truncf %86 : vector<8x128xf32> to vector<8x128xbf16>
    %c2_80 = arith.constant 2 : index
    %c0_81 = arith.constant 0 : index
    %c0_82 = arith.constant 0 : index
    %88 = vector.load %arg4[%c2_80, %c0_81, %c0_82] : memref<5x128x128xbf16, #tpu.memory_space<vmem>>, vector<1x128x128xbf16>
    %89 = vector.shape_cast %88 : vector<1x128x128xbf16> to vector<128x128xbf16>
    %cst_83 = arith.constant dense<0.000000e+00> : vector<8x128xf32>
    %90 = tpu.matmul %87, %89, %cst_83 {dimension_numbers = #tpu.dot_dimension_numbers<[1], [0], [0], [1], [0, 0, 1, 1], [], []>} : vector<8x128xbf16>, vector<128x128xbf16>, vector<8x128xf32> -> vector<8x128xf32>
    %91 = arith.addf %85, %90 : vector<8x128xf32>
    %c3_84 = arith.constant 3 : index
    %c0_85 = arith.constant 0 : index
    %92 = tpu.strided_load %arg10[%c3_84, %c0_85] {strides = array<i32: 2, 1>} : memref<24x128xf32, #tpu.memory_space<vmem>>, vector<8x128xf32>
    %93 = arith.truncf %92 : vector<8x128xf32> to vector<8x128xbf16>
    %c3_86 = arith.constant 3 : index
    %c0_87 = arith.constant 0 : index
    %c0_88 = arith.constant 0 : index
    %94 = vector.load %arg4[%c3_86, %c0_87, %c0_88] : memref<5x128x128xbf16, #tpu.memory_space<vmem>>, vector<1x128x128xbf16>
    %95 = vector.shape_cast %94 : vector<1x128x128xbf16> to vector<128x128xbf16>
    %cst_89 = arith.constant dense<0.000000e+00> : vector<8x128xf32>
    %96 = tpu.matmul %93, %95, %cst_89 {dimension_numbers = #tpu.dot_dimension_numbers<[1], [0], [0], [1], [0, 0, 1, 1], [], []>} : vector<8x128xbf16>, vector<128x128xbf16>, vector<8x128xf32> -> vector<8x128xf32>
    %97 = arith.addf %91, %96 : vector<8x128xf32>
    %c4_90 = arith.constant 4 : index
    %c0_91 = arith.constant 0 : index
    %98 = tpu.strided_load %arg10[%c4_90, %c0_91] {strides = array<i32: 2, 1>} : memref<24x128xf32, #tpu.memory_space<vmem>>, vector<8x128xf32>
    %99 = arith.truncf %98 : vector<8x128xf32> to vector<8x128xbf16>
    %c4_92 = arith.constant 4 : index
    %c0_93 = arith.constant 0 : index
    %c0_94 = arith.constant 0 : index
    %100 = vector.load %arg4[%c4_92, %c0_93, %c0_94] : memref<5x128x128xbf16, #tpu.memory_space<vmem>>, vector<1x128x128xbf16>
    %101 = vector.shape_cast %100 : vector<1x128x128xbf16> to vector<128x128xbf16>
    %cst_95 = arith.constant dense<0.000000e+00> : vector<8x128xf32>
    %102 = tpu.matmul %99, %101, %cst_95 {dimension_numbers = #tpu.dot_dimension_numbers<[1], [0], [0], [1], [0, 0, 1, 1], [], []>} : vector<8x128xbf16>, vector<128x128xbf16>, vector<8x128xf32> -> vector<8x128xf32>
    %103 = arith.addf %97, %102 : vector<8x128xf32>
    %104 = vector.broadcast %72 : vector<1x128xf32> to vector<8x128xf32>
    %105 = arith.addf %103, %104 : vector<8x128xf32>
    %cst_96 = arith.constant 0.000000e+00 : f32
    %106 = vector.broadcast %cst_96 : f32 to vector<8x128xf32>
    %107 = arith.maximumf %105, %106 : vector<8x128xf32>
    %c1_97 = arith.constant 1 : index
    %c0_98 = arith.constant 0 : index
    %108 = vector.load %arg11[%c1_97, %c0_98] : memref<16x128xf32, #tpu.memory_space<vmem>>, vector<8x128xf32>
    tpu.vector_store %arg11[%c1_97, %c0_98], %107 {strides = array<i32>} : memref<16x128xf32, #tpu.memory_space<vmem>>, vector<8x128xf32>,
    %109 = vector.extract_strided_slice %0 {offsets = [3, 0], sizes = [1, 128], strides = [1, 1]} : vector<4x128xf32> to vector<1x128xf32>
    %cst_99 = arith.constant 0.000000e+00 : f32
    %110 = vector.broadcast %cst_99 : f32 to vector<4x128xf32>
    %c0_100 = arith.constant 0 : index
    %c0_101 = arith.constant 0 : index
    %111 = tpu.strided_load %arg11[%c0_100, %c0_101] {strides = array<i32: 2, 1>} : memref<16x128xf32, #tpu.memory_space<vmem>>, vector<4x128xf32>
    %112 = arith.truncf %111 : vector<4x128xf32> to vector<4x128xbf16>
    %c0_102 = arith.constant 0 : index
    %c0_103 = arith.constant 0 : index
    %c0_104 = arith.constant 0 : index
    %113 = vector.load %arg5[%c0_102, %c0_103, %c0_104] : memref<3x128x128xbf16, #tpu.memory_space<vmem>>, vector<1x128x128xbf16>
    %114 = vector.shape_cast %113 : vector<1x128x128xbf16> to vector<128x128xbf16>
    %cst_105 = arith.constant dense<0.000000e+00> : vector<4x128xf32>
    %115 = tpu.matmul %112, %114, %cst_105 {dimension_numbers = #tpu.dot_dimension_numbers<[1], [0], [0], [1], [0, 0, 1, 1], [], []>} : vector<4x128xbf16>, vector<128x128xbf16>, vector<4x128xf32> -> vector<4x128xf32>
    %116 = arith.addf %110, %115 : vector<4x128xf32>
    %c1_106 = arith.constant 1 : index
    %c0_107 = arith.constant 0 : index
    %117 = tpu.strided_load %arg11[%c1_106, %c0_107] {strides = array<i32: 2, 1>} : memref<16x128xf32, #tpu.memory_space<vmem>>, vector<4x128xf32>
    %118 = arith.truncf %117 : vector<4x128xf32> to vector<4x128xbf16>
    %c1_108 = arith.constant 1 : index
    %c0_109 = arith.constant 0 : index
    %c0_110 = arith.constant 0 : index
    %119 = vector.load %arg5[%c1_108, %c0_109, %c0_110] : memref<3x128x128xbf16, #tpu.memory_space<vmem>>, vector<1x128x128xbf16>
    %120 = vector.shape_cast %119 : vector<1x128x128xbf16> to vector<128x128xbf16>
    %cst_111 = arith.constant dense<0.000000e+00> : vector<4x128xf32>
    %121 = tpu.matmul %118, %120, %cst_111 {dimension_numbers = #tpu.dot_dimension_numbers<[1], [0], [0], [1], [0, 0, 1, 1], [], []>} : vector<4x128xbf16>, vector<128x128xbf16>, vector<4x128xf32> -> vector<4x128xf32>
    %122 = arith.addf %116, %121 : vector<4x128xf32>
    %c2_112 = arith.constant 2 : index
    %c0_113 = arith.constant 0 : index
    %123 = tpu.strided_load %arg11[%c2_112, %c0_113] {strides = array<i32: 2, 1>} : memref<16x128xf32, #tpu.memory_space<vmem>>, vector<4x128xf32>
    %124 = arith.truncf %123 : vector<4x128xf32> to vector<4x128xbf16>
    %c2_114 = arith.constant 2 : index
    %c0_115 = arith.constant 0 : index
    %c0_116 = arith.constant 0 : index
    %125 = vector.load %arg5[%c2_114, %c0_115, %c0_116] : memref<3x128x128xbf16, #tpu.memory_space<vmem>>, vector<1x128x128xbf16>
    %126 = vector.shape_cast %125 : vector<1x128x128xbf16> to vector<128x128xbf16>
    %cst_117 = arith.constant dense<0.000000e+00> : vector<4x128xf32>
    %127 = tpu.matmul %124, %126, %cst_117 {dimension_numbers = #tpu.dot_dimension_numbers<[1], [0], [0], [1], [0, 0, 1, 1], [], []>} : vector<4x128xbf16>, vector<128x128xbf16>, vector<4x128xf32> -> vector<4x128xf32>
    %128 = arith.addf %122, %127 : vector<4x128xf32>
    %129 = vector.broadcast %109 : vector<1x128xf32> to vector<4x128xf32>
    %130 = arith.addf %128, %129 : vector<4x128xf32>
    %cst_118 = arith.constant 0.000000e+00 : f32
    %131 = vector.broadcast %cst_118 : f32 to vector<4x128xf32>
    %132 = arith.maximumf %130, %131 : vector<4x128xf32>
    %c0_119 = arith.constant 0 : index
    %c0_120 = arith.constant 0 : index
    %133 = vector.load %arg7[%c0_119, %c0_120] : memref<4x128xf32, #tpu.memory_space<vmem>>, vector<4x128xf32>
    tpu.vector_store %arg7[%c0_119, %c0_120], %132 {strides = array<i32>} : memref<4x128xf32, #tpu.memory_space<vmem>>, vector<4x128xf32>,
    return
  }
  func.func @transform_0(%arg0: i32) -> (i32, i32) {
    %c0_i32 = arith.constant 0 : i32
    %c0_i32_0 = arith.constant 0 : i32
    %c0_i32_1 = arith.constant 0 : i32
    return %c0_i32, %c0_i32_0 : i32, i32
  }
  func.func @transform_1(%arg0: i32) -> (i32, i32) {
    %c0_i32 = arith.constant 0 : i32
    %c0_i32_0 = arith.constant 0 : i32
    %c0_i32_1 = arith.constant 0 : i32
    return %c0_i32, %c0_i32_0 : i32, i32
  }
  func.func @transform_2(%arg0: i32) -> (i32, i32, i32) {
    %c0_i32 = arith.constant 0 : i32
    %c0_i32_0 = arith.constant 0 : i32
    %c0_i32_1 = arith.constant 0 : i32
    %c0_i32_2 = arith.constant 0 : i32
    return %c0_i32, %c0_i32_0, %c0_i32_1 : i32, i32, i32
  }
  func.func @transform_3(%arg0: i32) -> (i32, i32, i32) {
    %c0_i32 = arith.constant 0 : i32
    %c0_i32_0 = arith.constant 0 : i32
    %c0_i32_1 = arith.constant 0 : i32
    %c0_i32_2 = arith.constant 0 : i32
    return %c0_i32, %c0_i32_0, %c0_i32_1 : i32, i32, i32
  }
  func.func @transform_4(%arg0: i32) -> (i32, i32, i32) {
    %c0_i32 = arith.constant 0 : i32
    %c0_i32_0 = arith.constant 0 : i32
    %c0_i32_1 = arith.constant 0 : i32
    %c0_i32_2 = arith.constant 0 : i32
    return %c0_i32, %c0_i32_0, %c0_i32_1 : i32, i32, i32
  }
  func.func @transform_5(%arg0: i32) -> (i32, i32) {
    %c0_i32 = arith.constant 0 : i32
    %c0_i32_0 = arith.constant 0 : i32
    %c0_i32_1 = arith.constant 0 : i32
    return %c0_i32, %c0_i32_0 : i32, i32
  }
  func.func @transform_6(%arg0: i32) -> (i32, i32) {
    %c0_i32 = arith.constant 0 : i32
    %c0_i32_0 = arith.constant 0 : i32
    %c0_i32_1 = arith.constant 0 : i32
    return %c0_i32, %c0_i32_0 : i32, i32
  }
}

</mosaic_0001>

<bundles_post_ra>
// kernel: tpu_custom_call.1
= control target key start
LH: loop header
LB: loop body
LE: loop exit
PB: predicated region body
PF: predicated region fallthrough
CT: control target
= control target key end

     0   :  { %11 = vsyncpa [#allocation7], 0  ;;  %s3030_s0 = inlined_call_operand.hbm [shape: bf16[64,256], index: 0, kind: input, shape index: {}]   ;;  %s3031_s1 = inlined_call_operand.hbm [shape: bf16[256,128], index: 1, kind: input, shape index: {}]   ;;  %s3032_s2 = inlined_call_operand.hbm [shape: bf16[5,128,128], index: 2, kind: input, shape index: {}]   ;;  %s3033_s3 = inlined_call_operand.hbm [shape: bf16[5,128,128], index: 3, kind: input, shape index: {}]   ;;  %s3034_s4 = inlined_call_operand.hbm [shape: bf16[3,128,128], index: 4, kind: input, shape index: {}]   ;;  %s3035_s5 = inlined_call_operand.vmem [shape: f32[4,128], index: 5, kind: input, shape index: {}]   ;;  %s3036_s6 = inlined_call_operand.hbm [shape: f32[4,128], index: 6, kind: output, shape index: {}]  }
   0x1   :  { %12 = vsyncpa [#allocation10], 0 }
   0x2   :  { %13 = vsyncpa [#allocation13], 0 }
   0x3   :  { %14 = vsyncpa [#allocation8], 0  ;;  %s2749_s21 = smov [#allocation9]   ;;  %s2609_s25 = scalar_lea.hbm %s3031_s1, 2048 }
   0x4   :  { %s32_s22 = sshll.u32 %s2749_s21, 4  ;;  %p2610_p0 = scmp.ne.s32.totalorder %s3031_s1, %s2609_s25  ;;  %s33_s22 = int_to_ptr.vmem [resolvable:$true] %s32_s22 }
   0x5   :  { %p2613_p1 = scmp.lt.u32.totalorder %s2609_s25, %s3031_s1 }
   0x7   :  { %p2615_p2 = pnand %p2613_p1, %p2610_p0 }
   0x9   :  { %2618 = shalt.err (!%p2615_p2)
}
   0xa   :  { %s2619_s30 = scalar_lea.vmem %s33_s22, 2048  ;;  %p2624_p4 = scmp.lt.s32.totalorder %s33_s22, %s33_s22 }
   0xb   :  { %p2620_p3 = scmp.ne.s32.totalorder %s33_s22, %s2619_s30  ;;  %p2625_p5 = scmp.lt.s32.totalorder %s2619_s30, %s2619_s30 }
   0xd   :  { %p2626_p6 = por %p2625_p5, %p2624_p4 }
   0xf   :  { %p2627_p7 = pnand %p2626_p6, %p2620_p3 }
  0x11   :  { %2630 = shalt.err (!%p2627_p7)
}
  0x12   :  { %s2750_s7 = smov 64   ;;  %s2751_s8 = smov 4  }
  0x13   :  { %38 = dma.hbm_to_vmem [thread:$0]  %s3031_s1, 2048, %s33_s22, [#allocation10], %s2750_s7, %s2750_s7, %s2751_s8  }
  0x14   :  { %s2752_s11 = smov [#allocation12]   ;;  %s2753_s13 = smov [#allocation6]  }
  0x15   :  { %s56_s12 = sshll.u32 %s2752_s11, 4  ;;  %s20_s14 = sshll.u32 %s2753_s13, 4  ;;  %s57_s12 = int_to_ptr.vmem [resolvable:$true] %s56_s12  ;;  %s21_s14 = int_to_ptr.vmem [resolvable:$true] %s20_s14 }
  0x16   :  { %s2631_s17 = scalar_lea.hbm %s3033_s3, 5120 }
  0x17   :  { %p2632_p8 = scmp.ne.s32.totalorder %s3033_s3, %s2631_s17  ;;  %p2635_p9 = scmp.lt.u32.totalorder %s2631_s17, %s3033_s3 }
  0x19   :  { %p2637_p10 = pnand %p2635_p9, %p2632_p8 }
  0x1b   :  { %2640 = shalt.err (!%p2637_p10)
}
  0x1c   :  { %s2641_s1 = scalar_lea.vmem %s57_s12, 5120  ;;  %p2646_p12 = scmp.lt.s32.totalorder %s57_s12, %s57_s12 }
  0x1d   :  { %p2642_p11 = scmp.ne.s32.totalorder %s57_s12, %s2641_s1  ;;  %p2647_p13 = scmp.lt.s32.totalorder %s2641_s1, %s2641_s1 }
  0x1f   :  { %p2648_p0 = por %p2647_p13, %p2646_p12 }
  0x21   :  { %p2649_p1 = pnand %p2648_p0, %p2642_p11 }
  0x23   :  { %2652 = shalt.err (!%p2649_p1)
}
  0x24   :  { %62 = dma.hbm_to_vmem [thread:$0]  %s3033_s3, 5120, %s57_s12, [#allocation13], %s2750_s7, %s2750_s7, %s2751_s8  }
  0x25   :  { %s2653_s26 = scalar_lea.hbm %s3030_s0, 1024 }
  0x26   :  { %p2654_p2 = scmp.ne.s32.totalorder %s3030_s0, %s2653_s26  ;;  %p2657_p3 = scmp.lt.u32.totalorder %s2653_s26, %s3030_s0 }
  0x28   :  { %p2659_p4 = pnand %p2657_p3, %p2654_p2 }
  0x2a   :  { %2662 = shalt.err (!%p2659_p4)
}
  0x2b   :  { %s2663_s9 = scalar_lea.vmem %s21_s14, 1024  ;;  %p2668_p6 = scmp.lt.s32.totalorder %s21_s14, %s21_s14 }
  0x2c   :  { %p2664_p5 = scmp.ne.s32.totalorder %s21_s14, %s2663_s9  ;;  %p2669_p7 = scmp.lt.s32.totalorder %s2663_s9, %s2663_s9 }
  0x2e   :  { %p2670_p8 = por %p2669_p7, %p2668_p6 }
  0x30   :  { %p2671_p9 = pnand %p2670_p8, %p2664_p5 }
  0x32   :  { %2674 = shalt.err (!%p2671_p9)
}
  0x33   :  { %s2754_s3 = smov 128   ;;  %s2755_s10 = smov 8  }
  0x34   :  { %26 = dma.hbm_to_vmem [thread:$0]  %s3030_s0, 1024, %s21_s14, [#allocation7], %s2754_s3, %s2754_s3, %s2755_s10  }
  0x35   :  { %s2756_s13 = smov [#allocation11]   ;;  %s2757_s16 = smov [#allocation14]  }
  0x36   :  { %s44_s15 = sshll.u32 %s2756_s13, 4  ;;  %s68_s17 = sshll.u32 %s2757_s16, 4  ;;  %s45_s15 = int_to_ptr.vmem [resolvable:$true] %s44_s15  ;;  %s69_s17 = int_to_ptr.vmem [resolvable:$true] %s68_s17 }
  0x37   :  { %s2675_s20 = scalar_lea.hbm %s3032_s2, 5120 }
  0x38   :  { %p2676_p10 = scmp.ne.s32.totalorder %s3032_s2, %s2675_s20  ;;  %p2679_p11 = scmp.lt.u32.totalorder %s2675_s20, %s3032_s2 }
  0x3a   :  { %p2681_p12 = pnand %p2679_p11, %p2676_p10 }
  0x3c   :  { %2684 = shalt.err (!%p2681_p12)
}
  0x3d   :  { %s2685_s0 = scalar_lea.vmem %s45_s15, 5120  ;;  %p2690_p0 = scmp.lt.s32.totalorder %s45_s15, %s45_s15 }
  0x3e   :  { %p2686_p13 = scmp.ne.s32.totalorder %s45_s15, %s2685_s0  ;;  %p2691_p1 = scmp.lt.s32.totalorder %s2685_s0, %s2685_s0 }
  0x40   :  { %p2692_p2 = por %p2691_p1, %p2690_p0 }
  0x42   :  { %p2693_p3 = pnand %p2692_p2, %p2686_p13 }
  0x44   :  { %2696 = shalt.err (!%p2693_p3)
}
  0x45   :  { %50 = dma.hbm_to_vmem [thread:$0]  %s3032_s2, 5120, %s45_s15, [#allocation10], %s2750_s7, %s2750_s7, %s2751_s8  }
  0x46   :  { %s2697_s27 = scalar_lea.hbm %s3034_s4, 3072 }
  0x47   :  { %p2698_p4 = scmp.ne.s32.totalorder %s3034_s4, %s2697_s27  ;;  %p2701_p5 = scmp.lt.u32.totalorder %s2697_s27, %s3034_s4 }
  0x49   :  { %p2703_p6 = pnand %p2701_p5, %p2698_p4 }
  0x4b   :  { %2706 = shalt.err (!%p2703_p6)
}
  0x4c   :  { %s2707_s3 = scalar_lea.vmem %s69_s17, 3072  ;;  %p2712_p8 = scmp.lt.s32.totalorder %s69_s17, %s69_s17 }
  0x4d   :  { %p2708_p7 = scmp.ne.s32.totalorder %s69_s17, %s2707_s3  ;;  %p2713_p9 = scmp.lt.s32.totalorder %s2707_s3, %s2707_s3 }
  0x4f   :  { %p2714_p10 = por %p2713_p9, %p2712_p8 }
  0x51   :  { %p2715_p11 = pnand %p2714_p10, %p2708_p7 }
  0x53   :  { %2718 = shalt.err (!%p2715_p11)
}
  0x54   :  { %74 = dma.hbm_to_vmem [thread:$0]  %s3034_s4, 3072, %s69_s17, [#allocation13], %s2750_s7, %s2750_s7, %s2751_s8  }
  0x55   :  { %2741 = dma.done.wait [#allocation7], 1024  }
  0x56   :  { %2742 = vsyncadd [#allocation7], 4294966272 }
  0x57   :  { %2743 = dma.done.wait [#allocation10], 7168  }
  0x58   :  { %2744 = vsyncadd [#allocation10], 4294960128 }
  0x59   :  { %2745 = dma.done.wait [#allocation13], 8192  }
  0x5a   :  { %2746 = vsyncadd [#allocation13], 4294959104  ;;  %v2758_v0 = vmov 0.0   ;;  %v2477_v1 = vld [vmem:[#allocation9 + $0x40] sm:$0xff]   ;;  %v2479_v3 = vld [vmem:[#allocation9 + $0x48] sm:$0xff]   ;;  %vm2759_vm0 = vmmov 0   ;;  %v140_v41 = vlaneseq }
  0x5b   :  { %94 = vst [vmem:[#allocation3] sm:$0x3] %v2758_v0  ;;  %95 = vst [vmem:[#allocation3 + $0x1f] sm:$0x3] %v2758_v0  ;;  %2205 = vmatprep.subr.bf16.mxu1 %v2758_v0  ;;  %v2478_v2 = vld [vmem:[#allocation9] sm:$0xff]   ;;  %2048 = vmatprep.subr.bf16.mxu0 %v2477_v1  ;;  %v2480_v4 = vld [vmem:[#allocation9 + $0x8] sm:$0xff]  }
  0x5c   :  { %96 = vst [vmem:[#allocation4] sm:$0x3] %v2758_v0  ;;  %97 = vst [vmem:[#allocation4 + $0x11] sm:$0x3] %v2758_v0  ;;  %2049 = vmatpush3.bf16.msra.mxu0 %v2478_v2  ;;  %v2481_v5 = vld [vmem:[#allocation9 + $0x50] sm:$0xff]   ;;  %v2483_v7 = vld [vmem:[#allocation9 + $0x58] sm:$0xff]   ;;  %2221 = vmatprep.mubr.msk.bf16.mxu1 %vm2759_vm0, %v2758_v0 }
  0x5d   :  { %98 = vst [vmem:[#allocation5] sm:$0x1] %v2758_v0  ;;  %2050 = vmatprep.subr.bf16.mxu0 %v2479_v3  ;;  %v2482_v6 = vld [vmem:[#allocation9 + $0x10] sm:$0xff]   ;;  %v2484_v8 = vld [vmem:[#allocation9 + $0x18] sm:$0xff]   ;;  %v2485_v9 = vld [vmem:[#allocation9 + $0x60] sm:$0xff]   ;;  %v2895_v42 = vshrl.u32 %v140_v41, 7 }
  0x5e   :  { %v2486_v10 = vld [vmem:[#allocation9 + $0x20] sm:$0xff]   ;;  %v2487_v11 = vld [vmem:[#allocation9 + $0x68] sm:$0xff]   ;;  %v2489_v14 = vld [vmem:[#allocation9 + $0x70] sm:$0xff]  }
  0x5f   :  { %v2495_v12 = vld [vmem:[#allocation6 + $0x4] ss:$8 sps:$4 sm:$0xff]   ;;  %v2490_v15 = vld [vmem:[#allocation9 + $0x30] sm:$0xff]   ;;  %v2491_v16 = vld [vmem:[#allocation9 + $0x78] sm:$0xff]   ;;  %v142_v43 = vsub.s32 0, %v2895_v42 }
  0x60   :  { %2051 = vmatpush3.bf16.msra.mxu0 %v2480_v4  ;;  %v2488_v13 = vld [vmem:[#allocation9 + $0x28] sm:$0xff]   ;;  %312 = vmatprep.mubr.bf16.mxu0 %v2495_v12  ;;  %v2492_v17 = vld [vmem:[#allocation9 + $0x38] sm:$0xff]   ;;  %v2505_v25 = vld [vmem:[#allocation11 + $0x40] sm:$0xff]  }
  0x61   :  { %2052 = vmatprep.subr.bf16.mxu0 %v2481_v5  ;;  %v2493_v18 = vld [vmem:[#allocation6] ss:$8 sps:$4 sm:$0xff]   ;;  %v2496_v19 = vld [vmem:[#allocation6 + $0x14] ss:$8 sps:$4 sm:$0xff]   ;;  %v2498_v20 = vld [vmem:[#allocation6 + $0x10] ss:$8 sps:$4 sm:$0xff]   ;;  %2206 = vmatpush3.bf16.msra.mxu1 %v2505_v25 }
  0x62   :  { %v2499_v21 = vld [vmem:[#allocation6 + $0x24] ss:$8 sps:$4 sm:$0xff]   ;;  %v2501_v22 = vld [vmem:[#allocation6 + $0x20] ss:$8 sps:$4 sm:$0xff]   ;;  %v2502_v23 = vld [vmem:[#allocation6 + $0x34] ss:$8 sps:$4 sm:$0xff]   ;;  %2207 = vmatprep.subr.bf16.mxu1 %v2758_v0 }
  0x63   :  { %v2504_v24 = vld [vmem:[#allocation6 + $0x30] ss:$8 sps:$4 sm:$0xff]   ;;  %v2506_v26 = vld [vmem:[#allocation11] sm:$0xff]   ;;  %v2507_v27 = vld [vmem:[#allocation11 + $0x48] sm:$0xff]  }
  0x64   :  { %2053 = vmatpush3.bf16.msra.mxu0 %v2482_v6  ;;  %v2508_v28 = vld [vmem:[#allocation11 + $0x8] sm:$0xff]   ;;  %v2509_v29 = vld [vmem:[#allocation11 + $0x50] sm:$0xff]   ;;  %v2511_v31 = vld [vmem:[#allocation11 + $0x58] sm:$0xff]  }
  0x65   :  { %2054 = vmatprep.subr.bf16.mxu0 %v2483_v7  ;;  %2208 = vmatpush3.bf16.msra.mxu1 %v2507_v27  ;;  %v2510_v30 = vld [vmem:[#allocation11 + $0x10] sm:$0xff]   ;;  %v2512_v32 = vld [vmem:[#allocation11 + $0x18] sm:$0xff]   ;;  %v2513_v33 = vld [vmem:[#allocation11 + $0x60] sm:$0xff]  }
  0x66   :  { %2209 = vmatprep.subr.bf16.mxu1 %v2758_v0  ;;  %v2514_v34 = vld [vmem:[#allocation11 + $0x20] sm:$0xff]   ;;  %v2515_v35 = vld [vmem:[#allocation11 + $0x68] sm:$0xff]   ;;  %v2517_v37 = vld [vmem:[#allocation11 + $0x70] sm:$0xff]  }
  0x67   :  { %v2516_v36 = vld [vmem:[#allocation11 + $0x28] sm:$0xff]   ;;  %v2518_v38 = vld [vmem:[#allocation11 + $0x30] sm:$0xff]   ;;  %v2519_v39 = vld [vmem:[#allocation11 + $0x78] sm:$0xff]  }
  0x68   :  { %2055 = vmatpush3.bf16.msra.mxu0 %v2484_v8  ;;  %v2520_v40 = vld [vmem:[#allocation11 + $0x38] sm:$0xff]   ;;  %v2901_v44 = vld [vmem:[%s3035_s5] sm:$0xf]  ;;  %s2760_s5 = smov [#allocation15]  }
  0x69   :  { %2056 = vmatprep.subr.bf16.mxu0 %v2485_v9  ;;  %2210 = vmatpush3.bf16.msra.mxu1 %v2509_v29  ;;  %v143_v46 = vrot.slane %v2901_v44, %v142_v43  ;;  %s1909_s8 = sshll.u32 %s2760_s5, 4  ;;  %s1910_s8 = int_to_ptr.vmem [resolvable:$true] %s1909_s8 }
  0x6a   :  { %2211 = vmatprep.subr.bf16.mxu1 %v2758_v0  ;;  %s2719_s11 = scalar_lea.vmem %s1910_s8, 64  ;;  %p2724_p13 = scmp.lt.s32.totalorder %s1910_s8, %s1910_s8 }
  0x6b   :  { %p2720_p12 = scmp.ne.s32.totalorder %s1910_s8, %s2719_s11  ;;  %p2725_p0 = scmp.lt.s32.totalorder %s2719_s11, %s2719_s11 }
  0x6c   :  { %2057 = vmatpush3.bf16.msra.mxu0 %v2486_v10 }
  0x6d   :  { %2058 = vmatprep.subr.bf16.mxu0 %v2487_v11  ;;  %2212 = vmatpush3.bf16.msra.mxu1 %v2511_v31  ;;  %p2726_p1 = por %p2725_p0, %p2724_p13 }
  0x6e   :  { %2213 = vmatprep.subr.bf16.mxu1 %v2758_v0 }
  0x6f   :  { %p2727_p2 = pnand %p2726_p1, %p2720_p12 }
  0x70   :  { %2059 = vmatpush3.bf16.msra.mxu0 %v2488_v13 }
  0x71   :  { %2060 = vmatprep.subr.bf16.mxu0 %v2489_v14  ;;  %2214 = vmatpush3.bf16.msra.mxu1 %v2513_v33 }
  0x72   :  { %2215 = vmatprep.subr.bf16.mxu1 %v2758_v0 }
  0x74   :  { %2061 = vmatpush3.bf16.msra.mxu0 %v2490_v15 }
  0x75   :  { %2062 = vmatprep.subr.bf16.mxu0 %v2491_v16  ;;  %2216 = vmatpush3.bf16.msra.mxu1 %v2515_v35 }
  0x76   :  { %2217 = vmatprep.subr.bf16.mxu1 %v2758_v0 }
  0x78   :  { %2063 = vmatpush3.bf16.msra.mxu0 %v2492_v17 }
  0x79   :  { %2225 = vmatprep.subr.bf16.mxu0 %v2758_v0  ;;  %2218 = vmatpush3.bf16.msra.mxu1 %v2517_v37 }
  0x7a   :  { %2219 = vmatprep.subr.bf16.mxu1 %v2758_v0 }
  0x7b   :  { %313 = vmatmul.mubr.bf16.vlgmr.msra.gmra.mrb[0].mxu0 %v2493_v18 }
  0x7c   :  { %320 = vmatprep.mubr.bf16.mxu0 %v2496_v19  ;;  %2226 = vmatpush3.bf16.msra.mxu0 %v2506_v26 }
  0x7d   :  { %2227 = vmatprep.subr.bf16.mxu0 %v2758_v0  ;;  %2220 = vmatpush3.bf16.msra.mxu1 %v2519_v39 }
  0x7e   :  { %2245 = vmatprep.subr.bf16.mxu1 %v2758_v0 }
  0x80   :  { %2228 = vmatpush3.bf16.msra.mxu0 %v2508_v28 }
  0x81   :  { %2229 = vmatprep.subr.bf16.mxu0 %v2758_v0 }
  0x83   :  { %321 = vmatmul.mubr.bf16.gmra.mrb[4].mxu0 %v2498_v20 }
  0x84   :  { %328 = vmatprep.mubr.bf16.mxu0 %v2499_v21  ;;  %2230 = vmatpush3.bf16.msra.mxu0 %v2510_v30 }
  0x85   :  { %2231 = vmatprep.subr.bf16.mxu0 %v2758_v0 }
  0x88   :  { %2232 = vmatpush3.bf16.msra.mxu0 %v2512_v32 }
  0x89   :  { %2233 = vmatprep.subr.bf16.mxu0 %v2758_v0 }
  0x8b   :  { %329 = vmatmul.mubr.bf16.gmra.mrb[8].mxu0 %v2501_v22 }
  0x8c   :  { %336 = vmatprep.mubr.bf16.mxu0 %v2502_v23  ;;  %2234 = vmatpush3.bf16.msra.mxu0 %v2514_v34 }
  0x8d   :  { %2235 = vmatprep.subr.bf16.mxu0 %v2758_v0 }
  0x90   :  { %2236 = vmatpush3.bf16.msra.mxu0 %v2516_v36 }
  0x91   :  { %2237 = vmatprep.subr.bf16.mxu0 %v2758_v0 }
  0x93   :  { %337 = vmatmul.mubr.bf16.gmra.mrb[12].mxu0 %v2504_v24 }
  0x94   :  { %2241 = vmatprep.mubr.msk.bf16.mxu0 %vm2759_vm0, %v2758_v0  ;;  %2238 = vmatpush3.bf16.msra.mxu0 %v2518_v38 }
  0x95   :  { %2239 = vmatprep.subr.bf16.mxu0 %v2758_v0 }
  0x98   :  { %2240 = vmatpush3.bf16.msra.mxu0 %v2520_v40 }
  0x99   :  { %2265 = vmatprep.subr.bf16.mxu0 %v2758_v0 }
 0x14e   :  { %v2064_v45 = vpop.f32.mrb[0].mxu0 }
 0x14f   :  { %v2065_v47 = vpop.f32.mrb[1].mxu0 }
 0x150   :  { %v2066_v48 = vadd.f32 %v2065_v47, %v2064_v45  ;;  %v2067_v49 = vpop.f32.mrb[2].mxu0 }
 0x151   :  { %v2068_v50 = vpop.f32.mrb[3].mxu0 }
 0x152   :  { %v315_v51 = vadd.f32 %v2066_v48, %v143_v46  ;;  %v2069_v52 = vadd.f32 %v2068_v50, %v2067_v49 }
 0x154   :  { %v345_v53 = vmax.f32 %v315_v51, 0.0  ;;  %v318_v54 = vadd.f32 %v2069_v52, %v143_v46 }
 0x156   :  { %353 = vst [vmem:[#allocation2] sm:$0xff] %v345_v53  ;;  %v346_v55 = vmax.f32 %v318_v54, 0.0  ;;  %v2070_v56 = vpop.f32.mrb[4].mxu0 }
 0x157   :  { %v2071_v57 = vpop.f32.mrb[5].mxu0 }
 0x158   :  { %354 = vst [vmem:[#allocation2 + $0x8] sm:$0xff] %v346_v55  ;;  %v2072_v58 = vadd.f32 %v2071_v57, %v2070_v56  ;;  %v2073_v59 = vpop.f32.mrb[6].mxu0 }
 0x159   :  { %v2074_v60 = vpop.f32.mrb[7].mxu0 }
 0x15a   :  { %v323_v61 = vadd.f32 %v2072_v58, %v143_v46  ;;  %v2075_v62 = vadd.f32 %v2074_v60, %v2073_v59 }
 0x15c   :  { %v347_v63 = vmax.f32 %v323_v61, 0.0  ;;  %v326_v1 = vadd.f32 %v2075_v62, %v143_v46 }
 0x15e   :  { %355 = vst [vmem:[#allocation2 + $0x10] sm:$0xff] %v347_v63  ;;  %v348_v2 = vmax.f32 %v326_v1, 0.0  ;;  %v2076_v3 = vpop.f32.mrb[8].mxu0 }
 0x15f   :  { %v2077_v4 = vpop.f32.mrb[9].mxu0  ;;  %v361_v7 = vld [vmem:[#allocation2] ss:$2 sm:$0xff]  ;;  %v369_v8 = vld [vmem:[#allocation2 + $0x1] ss:$2 sm:$0xff] }
 0x160   :  { %356 = vst [vmem:[#allocation2 + $0x18] sm:$0xff] %v348_v2  ;;  %v2078_v5 = vadd.f32 %v2077_v4, %v2076_v3  ;;  %v2079_v6 = vpop.f32.mrb[10].mxu0  ;;  %v376_v12 = vmax.f32 %v361_v7, %v369_v8 }
 0x161   :  { %v2080_v9 = vpop.f32.mrb[11].mxu0 }
 0x162   :  { %v331_v10 = vadd.f32 %v2078_v5, %v143_v46  ;;  %v2081_v11 = vadd.f32 %v2080_v9, %v2079_v6 }
 0x164   :  { %v349_v13 = vmax.f32 %v331_v10, 0.0  ;;  %v334_v14 = vadd.f32 %v2081_v11, %v143_v46 }
 0x165   :  { %v381_v15 = vld [vmem:[#allocation2 + $0x2] ss:$2 sm:$0xff]  ;;  %v393_v17 = vld [vmem:[#allocation2 + $0x3] ss:$2 sm:$0xff] }
 0x166   :  { %v388_v16 = vmax.f32 %v376_v12, %v381_v15  ;;  %357 = vst [vmem:[#allocation2 + $0x20] sm:$0xff] %v349_v13  ;;  %v350_v18 = vmax.f32 %v334_v14, 0.0  ;;  %v2082_v19 = vpop.f32.mrb[12].mxu0  ;;  %v405_v21 = vld [vmem:[#allocation2 + $0x4] ss:$2 sm:$0xff] }
 0x167   :  { %v2083_v22 = vpop.f32.mrb[13].mxu0  ;;  %v363_v23 = vld [vmem:[#allocation2 + $0x10] ss:$2 sm:$0xff]  ;;  %v371_v24 = vld [vmem:[#allocation2 + $0x11] ss:$2 sm:$0xff] }
 0x168   :  { %v400_v20 = vmax.f32 %v388_v16, %v393_v17  ;;  %358 = vst [vmem:[#allocation2 + $0x28] sm:$0xff] %v350_v18  ;;  %v2084_v25 = vadd.f32 %v2083_v22, %v2082_v19  ;;  %v2085_v26 = vpop.f32.mrb[14].mxu0  ;;  %v417_v29 = vld [vmem:[#allocation2 + $0x5] ss:$2 sm:$0xff]  ;;  %v377_v33 = vmax.f32 %v363_v23, %v371_v24  ;;  %v429_v34 = vld [vmem:[#allocation2 + $0x6] ss:$2 sm:$0xff] }
 0x169   :  { %v2086_v28 = vpop.f32.mrb[15].mxu0  ;;  %v441_v39 = vld [vmem:[#allocation2 + $0x7] ss:$2 sm:$0xff] }
 0x16a   :  { %v412_v27 = vmax.f32 %v400_v20, %v405_v21  ;;  %v339_v30 = vadd.f32 %v2084_v25, %v143_v46  ;;  %v2087_v31 = vadd.f32 %v2086_v28, %v2085_v26  ;;  %v2521_v22 = vld [vmem:[#allocation11 + $0x80] sm:$0xff]  }
 0x16b   :  { %v2522_v25 = vld [vmem:[#allocation11 + $0xc0] sm:$0xff]  }
 0x16c   :  { %v424_v32 = vmax.f32 %v412_v27, %v417_v29  ;;  %v342_v36 = vadd.f32 %v2087_v31, %v143_v46  ;;  %v351_v41 = vmax.f32 %v339_v30, 0.0  ;;  %v2523_v30 = vld [vmem:[#allocation11 + $0x88] sm:$0xff]  }
 0x16d   :  { %v383_v35 = vld [vmem:[#allocation2 + $0x12] ss:$2 sm:$0xff]  ;;  %v395_v40 = vld [vmem:[#allocation2 + $0x13] ss:$2 sm:$0xff] }
 0x16e   :  { %v436_v37 = vmax.f32 %v424_v32, %v429_v34  ;;  %v389_v38 = vmax.f32 %v377_v33, %v383_v35  ;;  %v352_v43 = vmax.f32 %v342_v36, 0.0  ;;  %v407_v48 = vld [vmem:[#allocation2 + $0x14] ss:$2 sm:$0xff]  ;;  %359 = vst [vmem:[#allocation2 + $0x30] sm:$0xff] %v351_v41  ;;  %v419_v50 = vld [vmem:[#allocation2 + $0x15] ss:$2 sm:$0xff] }
 0x16f   :  { %v365_v52 = vld [vmem:[#allocation2 + $0x20] ss:$2 sm:$0xff]  ;;  %v373_v53 = vld [vmem:[#allocation2 + $0x21] ss:$2 sm:$0xff]  ;;  %v2524_v31 = vld [vmem:[#allocation11 + $0xc8] sm:$0xff]  }
 0x170   :  { %v448_v45 = vmax.f32 %v436_v37, %v441_v39  ;;  %v401_v47 = vmax.f32 %v389_v38, %v395_v40  ;;  %360 = vst [vmem:[#allocation2 + $0x38] sm:$0xff] %v352_v43  ;;  %v431_v54 = vld [vmem:[#allocation2 + $0x16] ss:$2 sm:$0xff]  ;;  %v443_v46 = vld [vmem:[#allocation2 + $0x17] ss:$2 sm:$0xff]  ;;  %v378_v56 = vmax.f32 %v365_v52, %v373_v53  ;;  %v2527_v34 = vld [vmem:[#allocation11 + $0x98] sm:$0xff]  }
 0x171   :  { %v2525_v32 = vld [vmem:[#allocation11 + $0x90] sm:$0xff]   ;;  %v2528_v35 = vld [vmem:[#allocation11 + $0xd8] sm:$0xff]   ;;  %v2529_v36 = vld [vmem:[#allocation11 + $0xa0] sm:$0xff]  }
 0x172   :  { %452 = vst [vmem:[#allocation3 + $0x2] sm:$0xff] %v448_v45  ;;  %v413_v49 = vmax.f32 %v401_v47, %v407_v48  ;;  %v2526_v33 = vld [vmem:[#allocation11 + $0xd0] sm:$0xff]   ;;  %v2530_v37 = vld [vmem:[#allocation11 + $0xe0] sm:$0xff]   ;;  %v2531_v38 = vld [vmem:[#allocation11 + $0xa8] sm:$0xff]  }
 0x173   :  { %v2532_v39 = vld [vmem:[#allocation11 + $0xe8] sm:$0xff]   ;;  %v2533_v40 = vld [vmem:[#allocation11 + $0xb0] sm:$0xff]   ;;  %v2535_v43 = vld [vmem:[#allocation11 + $0xb8] sm:$0xff]  }
 0x174   :  { %v425_v51 = vmax.f32 %v413_v49, %v419_v50  ;;  %v2534_v41 = vld [vmem:[#allocation11 + $0xf0] sm:$0xff]   ;;  %v2536_v45 = vld [vmem:[#allocation11 + $0xf8] sm:$0xff]  }
 0x175   :  { %v385_v58 = vld [vmem:[#allocation2 + $0x22] ss:$2 sm:$0xff]  ;;  %v397_v60 = vld [vmem:[#allocation2 + $0x23] ss:$2 sm:$0xff] }
 0x176   :  { %v437_v55 = vmax.f32 %v425_v51, %v431_v54  ;;  %v390_v59 = vmax.f32 %v378_v56, %v385_v58  ;;  %v409_v2 = vld [vmem:[#allocation2 + $0x24] ss:$2 sm:$0xff]  ;;  %v421_v6 = vld [vmem:[#allocation2 + $0x25] ss:$2 sm:$0xff]  ;;  %v2538_v54 = vld [vmem:[#allocation11 + $0x108] sm:$0xff]  }
 0x177   :  { %v367_v61 = vld [vmem:[#allocation2 + $0x30] ss:$2 sm:$0x1f]  ;;  %v375_v62 = vld [vmem:[#allocation2 + $0x31] ss:$2 sm:$0x1f] }
 0x178   :  { %v449_v57 = vmax.f32 %v437_v55, %v443_v46  ;;  %v402_v63 = vmax.f32 %v390_v59, %v397_v60  ;;  %v379_v1 = vmax.f32 %v367_v61, %v375_v62  ;;  %v387_v3 = vld [vmem:[#allocation2 + $0x32] ss:$2 sm:$0x1f]  ;;  %v399_v7 = vld [vmem:[#allocation2 + $0x33] ss:$2 sm:$0x1f] }
 0x179   :  { %v433_v10 = vld [vmem:[#allocation2 + $0x26] ss:$2 sm:$0xff]  ;;  %v445_v14 = vld [vmem:[#allocation2 + $0x27] ss:$2 sm:$0xff] }
 0x17a   :  { %453 = vst [vmem:[#allocation3 + $0xa] sm:$0xff] %v449_v57  ;;  %v414_v4 = vmax.f32 %v402_v63, %v409_v2  ;;  %v391_v5 = vmax.f32 %v379_v1, %v387_v3  ;;  %v411_v11 = vld [vmem:[#allocation2 + $0x34] ss:$2 sm:$0x1f]  ;;  %v2539_v55 = vld [vmem:[#allocation11 + $0x110] sm:$0xff]   ;;  %v2540_v46 = vld [vmem:[#allocation11 + $0x118] sm:$0xff]  }
 0x17b   :  { %v423_v15 = vld [vmem:[#allocation2 + $0x35] ss:$2 sm:$0x1f]  ;;  %v435_v18 = vld [vmem:[#allocation2 + $0x36] ss:$2 sm:$0x1f] }
 0x17c   :  { %v426_v8 = vmax.f32 %v414_v4, %v421_v6  ;;  %v403_v9 = vmax.f32 %v391_v5, %v399_v7  ;;  %v447_v20 = vld [vmem:[#allocation2 + $0x37] ss:$2 sm:$0x1f]  ;;  %v2543_v58 = vld [vmem:[#allocation11 + $0x130] sm:$0xff]   ;;  %v2544_v59 = vld [vmem:[#allocation11 + $0x138] sm:$0xff]  }
 0x17d   :  { %v2537_v51 = vld [vmem:[#allocation11 + $0x100] sm:$0xff]   ;;  %v2542_v57 = vld [vmem:[#allocation11 + $0x128] sm:$0xff]   ;;  %v2549_v4 = vld [vmem:[#allocation12 + $0x50] sm:$0xff]  }
 0x17e   :  { %v438_v12 = vmax.f32 %v426_v8, %v433_v10  ;;  %v415_v13 = vmax.f32 %v403_v9, %v411_v11  ;;  %v2541_v56 = vld [vmem:[#allocation11 + $0x120] sm:$0xff]   ;;  %v2547_v2 = vld [vmem:[#allocation12 + $0x48] sm:$0xff]   ;;  %v2550_v5 = vld [vmem:[#allocation12 + $0x10] sm:$0xff]  }
 0x17f   :  { %v2545_v63 = vld [vmem:[#allocation12 + $0x40] sm:$0xff]   ;;  %v2548_v3 = vld [vmem:[#allocation12 + $0x8] sm:$0xff]   ;;  %v2551_v6 = vld [vmem:[#allocation12 + $0x58] sm:$0xff]  }
 0x180   :  { %v450_v16 = vmax.f32 %v438_v12, %v445_v14  ;;  %v427_v17 = vmax.f32 %v415_v13, %v423_v15  ;;  %v2546_v1 = vld [vmem:[#allocation12] sm:$0xff]   ;;  %v2552_v7 = vld [vmem:[#allocation12 + $0x18] sm:$0xff]   ;;  %v2555_v10 = vld [vmem:[#allocation12 + $0x68] sm:$0xff]  }
 0x181   :  { %v477_v23 = vld [vmem:[#allocation3 + $0x1] ss:$2 sm:$0xff]  ;;  %v456_v24 = vld [vmem:[#allocation3] ss:$2 sm:$0xff]  ;;  %v2553_v8 = vld [vmem:[#allocation12 + $0x60] sm:$0xff]  }
 0x182   :  { %454 = vst [vmem:[#allocation3 + $0x12] sm:$0xff] %v450_v16  ;;  %v439_v19 = vmax.f32 %v427_v17, %v435_v18  ;;  %v677_v49 = vld [vmem:[#allocation3 + $0x2] ss:$2 sm:$0xff]  ;;  %v790_v50 = vld [vmem:[#allocation3 + $0x3] ss:$2 sm:$0xff]  ;;  %v2556_v11 = vld [vmem:[#allocation12 + $0x28] sm:$0xff]  }
 0x183   :  { %v2554_v9 = vld [vmem:[#allocation12 + $0x20] sm:$0xff]   ;;  %v2557_v12 = vld [vmem:[#allocation12 + $0x70] sm:$0xff]   ;;  %v2559_v14 = vld [vmem:[#allocation12 + $0x78] sm:$0xff]  }
 0x184   :  { %v451_v21 = vmax.f32 %v439_v19, %v447_v20  ;;  %v2558_v13 = vld [vmem:[#allocation12 + $0x30] sm:$0xff]   ;;  %v2560_v15 = vld [vmem:[#allocation12 + $0x38] sm:$0xff]  }
 0x186   :  { %455 = vst [vmem:[#allocation3 + $0x1a] sm:$0x1f] %v451_v21 }
 0x189   :  { %v903_v61 = vld [vmem:[#allocation3 + $0x4] ss:$2 sm:$0xff] }
 0x18d   :  { %v479_v26 = vld [vmem:[#allocation3 + $0x11] ss:$2 sm:$0x7f]  ;;  %v458_v27 = vld [vmem:[#allocation3 + $0x10] ss:$2 sm:$0x7f] }
 0x18e   :  { %v480_v28 = vpack.c.bf16 %v479_v26, %v477_v23  ;;  %v459_v29 = vpack.c.bf16 %v458_v27, %v456_v24  ;;  %v679_v47 = vld [vmem:[#allocation3 + $0x12] ss:$2 sm:$0x7f]  ;;  %v792_v48 = vld [vmem:[#allocation3 + $0x13] ss:$2 sm:$0x7f] }
 0x18f   :  { %v680_v52 = vpack.c.bf16 %v679_v47, %v677_v49  ;;  %v793_v53 = vpack.c.bf16 %v792_v48, %v790_v50  ;;  %v905_v60 = vld [vmem:[#allocation3 + $0x14] ss:$2 sm:$0x7f] }
 0x190   :  { %2222 = vmatmul.mubr.bf16.vlgmr.msra.gmra.mrb[0].mxu1 %v480_v28  ;;  %2242 = vmatmul.mubr.bf16.vlgmr.msra.gmra.mrb[16].mxu0 %v459_v29  ;;  %v906_v62 = vpack.c.bf16 %v905_v60, %v903_v61  ;;  %v2565_v60 = vld [vmem:[#allocation12 + $0x90] sm:$0xff]  }
 0x191   :  { %2246 = vmatpush3.bf16.msra.mxu1 %v2521_v22  ;;  %2266 = vmatpush3.bf16.msra.mxu0 %v2522_v25  ;;  %v2566_v61 = vld [vmem:[#allocation12 + $0xd0] sm:$0xff]  }
 0x192   :  { %2247 = vmatprep.subr.bf16.mxu1 %v2758_v0  ;;  %2267 = vmatprep.subr.bf16.mxu0 %v2758_v0 }
 0x193   :  { %2261 = vmatprep.mubr.msk.bf16.mxu1 %vm2759_vm0, %v2758_v0  ;;  %2281 = vmatprep.mubr.msk.bf16.mxu0 %vm2759_vm0, %v2758_v0 }
 0x195   :  { %2248 = vmatpush3.bf16.msra.mxu1 %v2523_v30  ;;  %2268 = vmatpush3.bf16.msra.mxu0 %v2524_v31 }
 0x196   :  { %2249 = vmatprep.subr.bf16.mxu1 %v2758_v0  ;;  %2269 = vmatprep.subr.bf16.mxu0 %v2758_v0 }
 0x199   :  { %2250 = vmatpush3.bf16.msra.mxu1 %v2525_v32  ;;  %2270 = vmatpush3.bf16.msra.mxu0 %v2526_v33 }
 0x19a   :  { %2251 = vmatprep.subr.bf16.mxu1 %v2758_v0  ;;  %2271 = vmatprep.subr.bf16.mxu0 %v2758_v0 }
 0x19d   :  { %2252 = vmatpush3.bf16.msra.mxu1 %v2527_v34  ;;  %2272 = vmatpush3.bf16.msra.mxu0 %v2528_v35 }
 0x19e   :  { %2253 = vmatprep.subr.bf16.mxu1 %v2758_v0  ;;  %2273 = vmatprep.subr.bf16.mxu0 %v2758_v0 }
 0x1a1   :  { %2254 = vmatpush3.bf16.msra.mxu1 %v2529_v36  ;;  %2274 = vmatpush3.bf16.msra.mxu0 %v2530_v37 }
 0x1a2   :  { %2255 = vmatprep.subr.bf16.mxu1 %v2758_v0  ;;  %2275 = vmatprep.subr.bf16.mxu0 %v2758_v0 }
 0x1a5   :  { %2256 = vmatpush3.bf16.msra.mxu1 %v2531_v38  ;;  %2276 = vmatpush3.bf16.msra.mxu0 %v2532_v39  ;;  %v1017_v38 = vsub.s32 1, %v2895_v42 }
 0x1a6   :  { %2257 = vmatprep.subr.bf16.mxu1 %v2758_v0  ;;  %2277 = vmatprep.subr.bf16.mxu0 %v2758_v0 }
 0x1a7   :  { %v1018_v39 = vrot.slane %v2901_v44, %v1017_v38  ;;  %v2600_v38 = vld [vmem:[#allocation14 + $0x38] sm:$0xff]  }
 0x1a9   :  { %2258 = vmatpush3.bf16.msra.mxu1 %v2533_v40  ;;  %2278 = vmatpush3.bf16.msra.mxu0 %v2534_v41 }
 0x1aa   :  { %2259 = vmatprep.subr.bf16.mxu1 %v2758_v0  ;;  %2279 = vmatprep.subr.bf16.mxu0 %v2758_v0 }
 0x1ad   :  { %2260 = vmatpush3.bf16.msra.mxu1 %v2535_v43  ;;  %2280 = vmatpush3.bf16.msra.mxu0 %v2536_v45 }
 0x1ae   :  { %2285 = vmatprep.subr.bf16.mxu1 %v2758_v0  ;;  %2305 = vmatprep.subr.bf16.mxu0 %v2758_v0 }
 0x1b0   :  { %2262 = vmatmul.mubr.bf16.vlgmr.msra.gmra.mrb[4].mxu1 %v680_v52  ;;  %2282 = vmatmul.mubr.bf16.vlgmr.msra.gmra.mrb[20].mxu0 %v793_v53  ;;  %v2561_v53 = vld [vmem:[#allocation12 + $0x80] sm:$0xff]  }
 0x1b1   :  { %2286 = vmatpush3.bf16.msra.mxu1 %v2537_v51  ;;  %2301 = vmatprep.mubr.msk.bf16.mxu1 %vm2759_vm0, %v2758_v0 }
 0x1b2   :  { %2287 = vmatprep.subr.bf16.mxu1 %v2758_v0  ;;  %2321 = vmatprep.mubr.msk.bf16.mxu0 %vm2759_vm0, %v2758_v0 }
 0x1b3   :  { %2306 = vmatpush3.bf16.msra.mxu0 %v2545_v63  ;;  %v2568_v63 = vld [vmem:[#allocation12 + $0xd8] sm:$0xff]  }
 0x1b4   :  { %2307 = vmatprep.subr.bf16.mxu0 %v2758_v0 }
 0x1b5   :  { %2288 = vmatpush3.bf16.msra.mxu1 %v2538_v54 }
 0x1b6   :  { %2289 = vmatprep.subr.bf16.mxu1 %v2758_v0 }
 0x1b7   :  { %2308 = vmatpush3.bf16.msra.mxu0 %v2547_v2  ;;  %v2570_v2 = vld [vmem:[#allocation12 + $0xe0] sm:$0xff]  }
 0x1b8   :  { %2309 = vmatprep.subr.bf16.mxu0 %v2758_v0 }
 0x1b9   :  { %2290 = vmatpush3.bf16.msra.mxu1 %v2539_v55 }
 0x1ba   :  { %2291 = vmatprep.subr.bf16.mxu1 %v2758_v0 }
 0x1bb   :  { %2310 = vmatpush3.bf16.msra.mxu0 %v2549_v4  ;;  %v2572_v4 = vld [vmem:[#allocation12 + $0xe8] sm:$0xff]  }
 0x1bc   :  { %2311 = vmatprep.subr.bf16.mxu0 %v2758_v0 }
 0x1bd   :  { %2292 = vmatpush3.bf16.msra.mxu1 %v2540_v46  ;;  %v2562_v46 = vld [vmem:[#allocation12 + $0xc0] sm:$0xff]  }
 0x1be   :  { %2293 = vmatprep.subr.bf16.mxu1 %v2758_v0 }
 0x1bf   :  { %2312 = vmatpush3.bf16.msra.mxu0 %v2551_v6  ;;  %v2574_v6 = vld [vmem:[#allocation12 + $0xf0] sm:$0xff]  }
 0x1c0   :  { %2313 = vmatprep.subr.bf16.mxu0 %v2758_v0 }
 0x1c1   :  { %2294 = vmatpush3.bf16.msra.mxu1 %v2541_v56 }
 0x1c2   :  { %2295 = vmatprep.subr.bf16.mxu1 %v2758_v0 }
 0x1c3   :  { %2314 = vmatpush3.bf16.msra.mxu0 %v2553_v8  ;;  %v2576_v8 = vld [vmem:[#allocation12 + $0xf8] sm:$0xff]  }
 0x1c4   :  { %2315 = vmatprep.subr.bf16.mxu0 %v2758_v0 }
 0x1c5   :  { %2296 = vmatpush3.bf16.msra.mxu1 %v2542_v57 }
 0x1c6   :  { %2297 = vmatprep.subr.bf16.mxu1 %v2758_v0 }
 0x1c7   :  { %2316 = vmatpush3.bf16.msra.mxu0 %v2555_v10 }
 0x1c8   :  { %2317 = vmatprep.subr.bf16.mxu0 %v2758_v0 }
 0x1c9   :  { %2298 = vmatpush3.bf16.msra.mxu1 %v2543_v58  ;;  %v2563_v58 = vld [vmem:[#allocation12 + $0x88] sm:$0xff]  }
 0x1ca   :  { %2299 = vmatprep.subr.bf16.mxu1 %v2758_v0 }
 0x1cb   :  { %2318 = vmatpush3.bf16.msra.mxu0 %v2557_v12 }
 0x1cc   :  { %2319 = vmatprep.subr.bf16.mxu0 %v2758_v0 }
 0x1cd   :  { %2300 = vmatpush3.bf16.msra.mxu1 %v2544_v59  ;;  %v2564_v59 = vld [vmem:[#allocation12 + $0xc8] sm:$0xff]  }
 0x1ce   :  { %2325 = vmatprep.subr.bf16.mxu1 %v2758_v0 }
 0x1cf   :  { %2320 = vmatpush3.bf16.msra.mxu0 %v2559_v14  ;;  %v2578_v14 = vld [vmem:[#allocation12 + $0x108] sm:$0xff]  }
 0x1d0   :  { %2302 = vmatmul.mubr.bf16.vlgmr.msra.gmra.mrb[8].mxu1 %v906_v62  ;;  %2345 = vmatprep.subr.bf16.mxu0 %v2758_v0  ;;  %v2567_v62 = vld [vmem:[#allocation12 + $0x98] sm:$0xff]  }
 0x1d1   :  { %2341 = vmatprep.mubr.msk.bf16.mxu1 %vm2759_vm0, %v2758_v0  ;;  %2326 = vmatpush3.bf16.msra.mxu1 %v2546_v1  ;;  %v2569_v1 = vld [vmem:[#allocation12 + $0xa0] sm:$0xff]  }
 0x1d2   :  { %2327 = vmatprep.subr.bf16.mxu1 %v2758_v0 }
 0x1d5   :  { %2328 = vmatpush3.bf16.msra.mxu1 %v2548_v3  ;;  %v2571_v3 = vld [vmem:[#allocation12 + $0xa8] sm:$0xff]  }
 0x1d6   :  { %2329 = vmatprep.subr.bf16.mxu1 %v2758_v0 }
 0x1d9   :  { %2330 = vmatpush3.bf16.msra.mxu1 %v2550_v5  ;;  %v2573_v5 = vld [vmem:[#allocation12 + $0xb0] sm:$0xff]  }
 0x1da   :  { %2331 = vmatprep.subr.bf16.mxu1 %v2758_v0 }
 0x1dd   :  { %2332 = vmatpush3.bf16.msra.mxu1 %v2552_v7  ;;  %v2575_v7 = vld [vmem:[#allocation12 + $0xb8] sm:$0xff]  }
 0x1de   :  { %2333 = vmatprep.subr.bf16.mxu1 %v2758_v0 }
 0x1e1   :  { %2334 = vmatpush3.bf16.msra.mxu1 %v2554_v9 }
 0x1e2   :  { %2335 = vmatprep.subr.bf16.mxu1 %v2758_v0 }
 0x1e5   :  { %2336 = vmatpush3.bf16.msra.mxu1 %v2556_v11  ;;  %v2577_v11 = vld [vmem:[#allocation12 + $0x100] sm:$0xff]  }
 0x1e6   :  { %2337 = vmatprep.subr.bf16.mxu1 %v2758_v0 }
 0x1e9   :  { %2338 = vmatpush3.bf16.msra.mxu1 %v2558_v13 }
 0x1ea   :  { %2339 = vmatprep.subr.bf16.mxu1 %v2758_v0 }
 0x1ed   :  { %2340 = vmatpush3.bf16.msra.mxu1 %v2560_v15  ;;  %v2579_v15 = vld [vmem:[#allocation12 + $0x110] sm:$0xff]  }
 0x1ee   :  { %2365 = vmatprep.subr.bf16.mxu1 %v2758_v0 }
 0x263   :  { %v580_v16 = vpop.f32.mrb[0].mxu1  ;;  %v669_v17 = vpop.f32.mrb[16].mxu0 }
 0x264   :  { %v670_v18 = vadd.f32 %v669_v17, %v580_v16  ;;  %v2223_v19 = vpop.f32.mrb[1].mxu1  ;;  %v2243_v20 = vpop.f32.mrb[17].mxu0  ;;  %v2580_v16 = vld [vmem:[#allocation12 + $0x118] sm:$0xff]   ;;  %v2581_v17 = vld [vmem:[#allocation12 + $0x120] sm:$0xff]  }
 0x265   :  { %v583_v21 = vpop.f32.mrb[2].mxu1  ;;  %v672_v22 = vpop.f32.mrb[18].mxu0  ;;  %v2583_v19 = vld [vmem:[#allocation12 + $0x130] sm:$0xff]   ;;  %v2584_v20 = vld [vmem:[#allocation12 + $0x138] sm:$0xff]  }
 0x266   :  { %v673_v23 = vadd.f32 %v672_v22, %v583_v21  ;;  %v2224_v24 = vpop.f32.mrb[3].mxu1  ;;  %v2244_v25 = vpop.f32.mrb[19].mxu0 }
 0x267   :  { %v2586_v24 = vld [vmem:[#allocation14] sm:$0xff]   ;;  %v2587_v25 = vld [vmem:[#allocation14 + $0x48] sm:$0xff]  }
 0x283   :  { %v780_v26 = vpop.f32.mrb[4].mxu1  ;;  %v893_v27 = vpop.f32.mrb[20].mxu0 }
 0x284   :  { %v787_v28 = vadd.f32 %v780_v26, %v670_v18  ;;  %v2263_v29 = vpop.f32.mrb[5].mxu1  ;;  %v2283_v30 = vpop.f32.mrb[21].mxu0  ;;  %v2582_v18 = vld [vmem:[#allocation12 + $0x128] sm:$0xff]  }
 0x285   :  { %v783_v31 = vpop.f32.mrb[6].mxu1  ;;  %v896_v32 = vpop.f32.mrb[22].mxu0  ;;  %v2588_v26 = vld [vmem:[#allocation14 + $0x8] sm:$0xff]   ;;  %v2591_v29 = vld [vmem:[#allocation14 + $0x58] sm:$0xff]  }
 0x286   :  { %v900_v33 = vadd.f32 %v893_v27, %v787_v28  ;;  %v788_v34 = vadd.f32 %v783_v31, %v673_v23  ;;  %v2264_v35 = vpop.f32.mrb[7].mxu1  ;;  %v2284_v36 = vpop.f32.mrb[23].mxu0  ;;  %v2585_v23 = vld [vmem:[#allocation14 + $0x40] sm:$0xff]   ;;  %v2589_v27 = vld [vmem:[#allocation14 + $0x50] sm:$0xff]   ;;  %v2592_v30 = vld [vmem:[#allocation14 + $0x18] sm:$0xff]  }
 0x287   :  { %v2590_v28 = vld [vmem:[#allocation14 + $0x10] sm:$0xff]   ;;  %v2593_v31 = vld [vmem:[#allocation14 + $0x60] sm:$0xff]  }
 0x288   :  { %v901_v37 = vadd.f32 %v896_v32, %v788_v34  ;;  %v2594_v32 = vld [vmem:[#allocation14 + $0x20] sm:$0xff]   ;;  %v2596_v34 = vld [vmem:[#allocation14 + $0x28] sm:$0xff]   ;;  %v2597_v35 = vld [vmem:[#allocation14 + $0x70] sm:$0xff]  }
 0x289   :  { %v2598_v36 = vld [vmem:[#allocation14 + $0x30] sm:$0xff]  }
 0x2a3   :  { %v1006_v40 = vpop.f32.mrb[8].mxu1 }
 0x2a4   :  { %v1013_v41 = vadd.f32 %v1006_v40, %v900_v33  ;;  %v2303_v43 = vpop.f32.mrb[9].mxu1  ;;  %v2595_v33 = vld [vmem:[#allocation14 + $0x68] sm:$0xff]  }
 0x2a5   :  { %v1009_v45 = vpop.f32.mrb[10].mxu1 }
 0x2a6   :  { %v1019_v47 = vadd.f32 %v1018_v39, %v1013_v41  ;;  %v1014_v48 = vadd.f32 %v1009_v45, %v901_v37  ;;  %v2304_v49 = vpop.f32.mrb[11].mxu1  ;;  %v2599_v37 = vld [vmem:[#allocation14 + $0x78] sm:$0xff]  }
 0x2a8   :  { %v1021_v50 = vmax.f32 %v1019_v47, 0.0  ;;  %v1020_v51 = vadd.f32 %v1018_v39, %v1014_v48 }
 0x2aa   :  { %1023 = vst [vmem:[#allocation4 + $0x2] sm:$0xff] %v1021_v50  ;;  %v1022_v52 = vmax.f32 %v1020_v51, 0.0 }
 0x2ac   :  { %1024 = vst [vmem:[#allocation4 + $0xa] sm:$0x7f] %v1022_v52 }
 0x2b3   :  { %v1044_v54 = vld [vmem:[#allocation4 + $0x1] ss:$2 sm:$0xff]  ;;  %v1025_v55 = vld [vmem:[#allocation4] ss:$2 sm:$0xff] }
 0x2b4   :  { %v1045_v56 = vpack.c.bf16 %v1044_v54, %v1044_v54  ;;  %v1026_v57 = vpack.c.bf16 %v1025_v55, %v1025_v55  ;;  %v1240_v9 = vld [vmem:[#allocation4 + $0x2] ss:$2 sm:$0xff]  ;;  %v1349_v10 = vld [vmem:[#allocation4 + $0x3] ss:$2 sm:$0xff] }
 0x2b5   :  { %v1241_v12 = vpack.c.bf16 %v1240_v9, %v1240_v9  ;;  %v1350_v13 = vpack.c.bf16 %v1349_v10, %v1349_v10  ;;  %v1458_v21 = vld [vmem:[#allocation4 + $0x4] ss:$2 sm:$0xff] }
 0x2b6   :  { %2322 = vmatmul.mubr.bf16.vlgmr.msra.gmra.mrb[24].mxu0 %v1045_v56  ;;  %2342 = vmatmul.mubr.bf16.vlgmr.msra.gmra.mrb[12].mxu1 %v1026_v57  ;;  %v1459_v22 = vpack.c.bf16 %v1458_v21, %v1458_v21 }
 0x2b7   :  { %2346 = vmatpush3.bf16.msra.mxu0 %v2561_v53  ;;  %2366 = vmatpush3.bf16.msra.mxu1 %v2562_v46 }
 0x2b8   :  { %2347 = vmatprep.subr.bf16.mxu0 %v2758_v0  ;;  %2367 = vmatprep.subr.bf16.mxu1 %v2758_v0 }
 0x2b9   :  { %2361 = vmatprep.mubr.msk.bf16.mxu0 %vm2759_vm0, %v2758_v0  ;;  %2381 = vmatprep.mubr.msk.bf16.mxu1 %vm2759_vm0, %v2758_v0 }
 0x2bb   :  { %2348 = vmatpush3.bf16.msra.mxu0 %v2563_v58  ;;  %2368 = vmatpush3.bf16.msra.mxu1 %v2564_v59 }
 0x2bc   :  { %2349 = vmatprep.subr.bf16.mxu0 %v2758_v0  ;;  %2369 = vmatprep.subr.bf16.mxu1 %v2758_v0 }
 0x2bf   :  { %2350 = vmatpush3.bf16.msra.mxu0 %v2565_v60  ;;  %2370 = vmatpush3.bf16.msra.mxu1 %v2566_v61  ;;  %v1568_v60 = vsub.s32 2, %v2895_v42 }
 0x2c0   :  { %2351 = vmatprep.subr.bf16.mxu0 %v2758_v0  ;;  %2371 = vmatprep.subr.bf16.mxu1 %v2758_v0 }
 0x2c1   :  { %v1569_v61 = vrot.slane %v2901_v44, %v1568_v60 }
 0x2c3   :  { %2352 = vmatpush3.bf16.msra.mxu0 %v2567_v62  ;;  %2372 = vmatpush3.bf16.msra.mxu1 %v2568_v63 }
 0x2c4   :  { %2353 = vmatprep.subr.bf16.mxu0 %v2758_v0  ;;  %2373 = vmatprep.subr.bf16.mxu1 %v2758_v0 }
 0x2c7   :  { %2354 = vmatpush3.bf16.msra.mxu0 %v2569_v1  ;;  %2374 = vmatpush3.bf16.msra.mxu1 %v2570_v2 }
 0x2c8   :  { %2355 = vmatprep.subr.bf16.mxu0 %v2758_v0  ;;  %2375 = vmatprep.subr.bf16.mxu1 %v2758_v0 }
 0x2cb   :  { %2356 = vmatpush3.bf16.msra.mxu0 %v2571_v3  ;;  %2376 = vmatpush3.bf16.msra.mxu1 %v2572_v4 }
 0x2cc   :  { %2357 = vmatprep.subr.bf16.mxu0 %v2758_v0  ;;  %2377 = vmatprep.subr.bf16.mxu1 %v2758_v0 }
 0x2cf   :  { %2358 = vmatpush3.bf16.msra.mxu0 %v2573_v5  ;;  %2378 = vmatpush3.bf16.msra.mxu1 %v2574_v6  ;;  %v2601_v6 = vld [vmem:[#allocation14 + $0x80] sm:$0xff]  }
 0x2d0   :  { %2359 = vmatprep.subr.bf16.mxu0 %v2758_v0  ;;  %2379 = vmatprep.subr.bf16.mxu1 %v2758_v0 }
 0x2d3   :  { %2360 = vmatpush3.bf16.msra.mxu0 %v2575_v7  ;;  %2380 = vmatpush3.bf16.msra.mxu1 %v2576_v8 }
 0x2d4   :  { %2385 = vmatprep.subr.bf16.mxu0 %v2758_v0  ;;  %2405 = vmatprep.subr.bf16.mxu1 %v2758_v0 }
 0x2d6   :  { %2362 = vmatmul.mubr.bf16.vlgmr.msra.gmra.mrb[28].mxu0 %v1241_v12  ;;  %2382 = vmatmul.mubr.bf16.vlgmr.msra.gmra.mrb[16].mxu1 %v1350_v13  ;;  %v2603_v12 = vld [vmem:[#allocation14 + $0x90] sm:$0xff]   ;;  %v2604_v13 = vld [vmem:[#allocation14 + $0x98] sm:$0xff]  }
 0x2d7   :  { %2386 = vmatpush3.bf16.msra.mxu0 %v2577_v11  ;;  %2401 = vmatprep.mubr.msk.bf16.mxu0 %vm2759_vm0, %v2758_v0  ;;  %v2602_v11 = vld [vmem:[#allocation14 + $0x88] sm:$0xff]  }
 0x2d8   :  { %2387 = vmatprep.subr.bf16.mxu0 %v2758_v0  ;;  %2421 = vmatprep.mubr.msk.bf16.mxu1 %vm2759_vm0, %v2758_v0 }
 0x2d9   :  { %2406 = vmatpush3.bf16.msra.mxu1 %v2585_v23 }
 0x2da   :  { %2407 = vmatprep.subr.bf16.mxu1 %v2758_v0 }
 0x2db   :  { %2388 = vmatpush3.bf16.msra.mxu0 %v2578_v14  ;;  %v2605_v14 = vld [vmem:[#allocation14 + $0xa0] sm:$0xff]  }
 0x2dc   :  { %2389 = vmatprep.subr.bf16.mxu0 %v2758_v0 }
 0x2dd   :  { %2408 = vmatpush3.bf16.msra.mxu1 %v2587_v25 }
 0x2de   :  { %2409 = vmatprep.subr.bf16.mxu1 %v2758_v0 }
 0x2df   :  { %2390 = vmatpush3.bf16.msra.mxu0 %v2579_v15  ;;  %v2606_v15 = vld [vmem:[#allocation14 + $0xa8] sm:$0xff]  }
 0x2e0   :  { %2391 = vmatprep.subr.bf16.mxu0 %v2758_v0 }
 0x2e1   :  { %2410 = vmatpush3.bf16.msra.mxu1 %v2589_v27 }
 0x2e2   :  { %2411 = vmatprep.subr.bf16.mxu1 %v2758_v0 }
 0x2e3   :  { %2392 = vmatpush3.bf16.msra.mxu0 %v2580_v16  ;;  %v2607_v16 = vld [vmem:[#allocation14 + $0xb0] sm:$0xff]  }
 0x2e4   :  { %2393 = vmatprep.subr.bf16.mxu0 %v2758_v0 }
 0x2e5   :  { %2412 = vmatpush3.bf16.msra.mxu1 %v2591_v29  ;;  %v1898_v29 = vsub.s32 3, %v2895_v42 }
 0x2e6   :  { %2413 = vmatprep.subr.bf16.mxu1 %v2758_v0 }
 0x2e7   :  { %2394 = vmatpush3.bf16.msra.mxu0 %v2581_v17  ;;  %v2608_v17 = vld [vmem:[#allocation14 + $0xb8] sm:$0xff]  }
 0x2e8   :  { %2395 = vmatprep.subr.bf16.mxu0 %v2758_v0 }
 0x2e9   :  { %2414 = vmatpush3.bf16.msra.mxu1 %v2593_v31 }
 0x2ea   :  { %2415 = vmatprep.subr.bf16.mxu1 %v2758_v0 }
 0x2eb   :  { %2396 = vmatpush3.bf16.msra.mxu0 %v2582_v18 }
 0x2ec   :  { %2397 = vmatprep.subr.bf16.mxu0 %v2758_v0 }
 0x2ed   :  { %2416 = vmatpush3.bf16.msra.mxu1 %v2595_v33 }
 0x2ee   :  { %2417 = vmatprep.subr.bf16.mxu1 %v2758_v0 }
 0x2ef   :  { %2398 = vmatpush3.bf16.msra.mxu0 %v2583_v19 }
 0x2f0   :  { %2399 = vmatprep.subr.bf16.mxu0 %v2758_v0 }
 0x2f1   :  { %2418 = vmatpush3.bf16.msra.mxu1 %v2597_v35 }
 0x2f2   :  { %2419 = vmatprep.subr.bf16.mxu1 %v2758_v0 }
 0x2f3   :  { %2400 = vmatpush3.bf16.msra.mxu0 %v2584_v20 }
 0x2f4   :  { %2425 = vmatprep.subr.bf16.mxu0 %v2758_v0 }
 0x2f5   :  { %2420 = vmatpush3.bf16.msra.mxu1 %v2599_v37 }
 0x2f6   :  { %2402 = vmatmul.mubr.bf16.vlgmr.msra.gmra.mrb[32].mxu0 %v1459_v22  ;;  %2445 = vmatprep.subr.bf16.mxu1 %v2758_v0 }
 0x2f7   :  { %2441 = vmatprep.mubr.msk.bf16.mxu0 %vm2759_vm0, %v2758_v0  ;;  %2426 = vmatpush3.bf16.msra.mxu0 %v2586_v24 }
 0x2f8   :  { %2427 = vmatprep.subr.bf16.mxu0 %v2758_v0 }
 0x2fb   :  { %2428 = vmatpush3.bf16.msra.mxu0 %v2588_v26 }
 0x2fc   :  { %2429 = vmatprep.subr.bf16.mxu0 %v2758_v0 }
 0x2ff   :  { %2430 = vmatpush3.bf16.msra.mxu0 %v2590_v28 }
 0x300   :  { %2431 = vmatprep.subr.bf16.mxu0 %v2758_v0 }
 0x303   :  { %2432 = vmatpush3.bf16.msra.mxu0 %v2592_v30  ;;  %v1899_v30 = vrot.slane %v2901_v44, %v1898_v29 }
 0x304   :  { %2433 = vmatprep.subr.bf16.mxu0 %v2758_v0 }
 0x307   :  { %2434 = vmatpush3.bf16.msra.mxu0 %v2594_v32 }
 0x308   :  { %2435 = vmatprep.subr.bf16.mxu0 %v2758_v0 }
 0x30b   :  { %2436 = vmatpush3.bf16.msra.mxu0 %v2596_v34 }
 0x30c   :  { %2437 = vmatprep.subr.bf16.mxu0 %v2758_v0 }
 0x30f   :  { %2438 = vmatpush3.bf16.msra.mxu0 %v2598_v36 }
 0x310   :  { %2439 = vmatprep.subr.bf16.mxu0 %v2758_v0 }
 0x313   :  { %2440 = vmatpush3.bf16.msra.mxu0 %v2600_v38 }
 0x389   :  { %v1145_v39 = vpop.f32.mrb[24].mxu0  ;;  %v1233_v40 = vpop.f32.mrb[12].mxu1 }
 0x38a   :  { %v1234_v41 = vadd.f32 %v1233_v40, %v1145_v39  ;;  %v2323_v43 = vpop.f32.mrb[25].mxu0  ;;  %v2343_v45 = vpop.f32.mrb[13].mxu1 }
 0x38b   :  { %v1148_v47 = vpop.f32.mrb[26].mxu0  ;;  %v1236_v48 = vpop.f32.mrb[14].mxu1 }
 0x38c   :  { %v2324_v49 = vpop.f32.mrb[27].mxu0  ;;  %v2344_v50 = vpop.f32.mrb[15].mxu1 }
 0x3a9   :  { %v1341_v51 = vpop.f32.mrb[28].mxu0  ;;  %v1450_v52 = vpop.f32.mrb[16].mxu1 }
 0x3aa   :  { %v1347_v53 = vadd.f32 %v1341_v51, %v1234_v41  ;;  %v2363_v54 = vpop.f32.mrb[29].mxu0  ;;  %v2383_v55 = vpop.f32.mrb[17].mxu1 }
 0x3ab   :  { %v1344_v46 = vpop.f32.mrb[30].mxu0  ;;  %v1453_v56 = vpop.f32.mrb[18].mxu1 }
 0x3ac   :  { %v1456_v57 = vadd.f32 %v1450_v52, %v1347_v53  ;;  %v2364_v58 = vpop.f32.mrb[31].mxu0  ;;  %v2384_v59 = vpop.f32.mrb[19].mxu1 }
 0x3c9   :  { %v1559_v62 = vpop.f32.mrb[32].mxu0 }
 0x3ca   :  { %v1565_v63 = vadd.f32 %v1559_v62, %v1456_v57  ;;  %v2403_v1 = vpop.f32.mrb[33].mxu0 }
 0x3cb   :  { %v1562_v2 = vpop.f32.mrb[34].mxu0 }
 0x3cc   :  { %v1570_v3 = vadd.f32 %v1569_v61, %v1565_v63  ;;  %v2404_v4 = vpop.f32.mrb[35].mxu0 }
 0x3ce   :  { %v1571_v5 = vmax.f32 %v1570_v3, 0.0 }
 0x3d0   :  { %1572 = vst [vmem:[#allocation5 + $0x1] sm:$0xff] %v1571_v5 }
 0x3d7   :  { %v1592_v7 = vld [vmem:[#allocation5 + $0x1] ss:$2 sm:$0xf]  ;;  %v1573_v8 = vld [vmem:[#allocation5] ss:$2 sm:$0xf] }
 0x3d8   :  { %v1593_v9 = vpack.c.bf16 %v1592_v7, %v1592_v7  ;;  %v1574_v10 = vpack.c.bf16 %v1573_v8, %v1573_v8  ;;  %v1788_v18 = vld [vmem:[#allocation5 + $0x2] ss:$2 sm:$0xf] }
 0x3d9   :  { %v1789_v19 = vpack.c.bf16 %v1788_v18, %v1788_v18 }
 0x3da   :  { %2422 = vmatmul.mubr.bf16.vlgmr.msra.gmra.mrb[20].mxu1 %v1593_v9  ;;  %2442 = vmatmul.mubr.bf16.vlgmr.msra.gmra.mrb[36].mxu0 %v1574_v10 }
 0x3db   :  { %2446 = vmatpush3.bf16.msra.mxu1 %v2601_v6  ;;  %2461 = vmatprep.mubr.msk.bf16.mxu1 %vm2759_vm0, %v2758_v0 }
 0x3dc   :  { %2447 = vmatprep.subr.bf16.mxu1 %v2758_v0 }
 0x3df   :  { %2448 = vmatpush3.bf16.msra.mxu1 %v2602_v11 }
 0x3e0   :  { %2449 = vmatprep.subr.bf16.mxu1 %v2758_v0 }
 0x3e3   :  { %2450 = vmatpush3.bf16.msra.mxu1 %v2603_v12 }
 0x3e4   :  { %2451 = vmatprep.subr.bf16.mxu1 %v2758_v0 }
 0x3e7   :  { %2452 = vmatpush3.bf16.msra.mxu1 %v2604_v13 }
 0x3e8   :  { %2453 = vmatprep.subr.bf16.mxu1 %v2758_v0 }
 0x3eb   :  { %2454 = vmatpush3.bf16.msra.mxu1 %v2605_v14 }
 0x3ec   :  { %2455 = vmatprep.subr.bf16.mxu1 %v2758_v0 }
 0x3ef   :  { %2456 = vmatpush3.bf16.msra.mxu1 %v2606_v15 }
 0x3f0   :  { %2457 = vmatprep.subr.bf16.mxu1 %v2758_v0 }
 0x3f3   :  { %2458 = vmatpush3.bf16.msra.mxu1 %v2607_v16 }
 0x3f4   :  { %2459 = vmatprep.subr.bf16.mxu1 %v2758_v0 }
 0x3f7   :  { %2460 = vmatpush3.bf16.msra.mxu1 %v2608_v17 }
 0x3fa   :  { %2462 = vmatmul.mubr.bf16.vlgmr.msra.gmra.mrb[24].mxu1 %v1789_v19 }
 0x4ad   :  { %v1693_v20 = vpop.f32.mrb[20].mxu1  ;;  %v1781_v21 = vpop.f32.mrb[36].mxu0 }
 0x4ae   :  { %v1782_v22 = vadd.f32 %v1781_v21, %v1693_v20  ;;  %v2423_v23 = vpop.f32.mrb[21].mxu1  ;;  %v2443_v24 = vpop.f32.mrb[37].mxu0 }
 0x4af   :  { %v1696_v25 = vpop.f32.mrb[22].mxu1  ;;  %v1784_v26 = vpop.f32.mrb[38].mxu0 }
 0x4b0   :  { %v2424_v27 = vpop.f32.mrb[23].mxu1  ;;  %v2444_v28 = vpop.f32.mrb[39].mxu0 }
 0x4cd   :  { %v1889_v31 = vpop.f32.mrb[24].mxu1 }
 0x4ce   :  { %v1895_v32 = vadd.f32 %v1889_v31, %v1782_v22  ;;  %v2463_v0 = vpop.f32.mrb[25].mxu1 }
 0x4cf   :  { %v1892_v33 = vpop.f32.mrb[26].mxu1 }
 0x4d0   :  { %v1900_v34 = vadd.f32 %v1899_v30, %v1895_v32  ;;  %v2464_v35 = vpop.f32.mrb[27].mxu1 }
 0x4d2   :  { %v1901_v36 = vmax.f32 %v1900_v34, 0.0 }
 0x4d4   :  { %1902 = vst [vmem:[#allocation15] sm:$0xf] %v1901_v36 }
 0x4d5   :  { %2730 = shalt.err (!%p2727_p2)
}
 0x4d6   :  { %s2731_s15 = scalar_lea.hbm %s3036_s6, 64 }
 0x4d7   :  { %p2732_p3 = scmp.ne.s32.totalorder %s3036_s6, %s2731_s15  ;;  %p2735_p4 = scmp.lt.u32.totalorder %s2731_s15, %s3036_s6 }
 0x4d9   :  { %p2737_p5 = pnand %p2735_p4, %p2732_p3 }
 0x4db   :  { %2740 = shalt.err (!%p2737_p5)
}
 0x4dc   :  { %1912 = dma.vmem_to_hbm [thread:$0]  %s1910_s8, 64, %s3036_s6, [#allocation8]  }
 0x4dd   :  { %2747 = dma.done.wait [#allocation8], 64  }
 0x4de   :  { %2748 = vsyncadd [#allocation8], 4294967232 }
 0x4df   :  { %1916 = vsyncpa [#allocation7], 1 }
 0x4e0   :  { %1917 = vsyncpa [#allocation10], 1 }
 0x4e1   :  { %1918 = vsyncpa [#allocation13], 1 }
 0x4e2   :  { %1919 = vsyncpa [#allocation8], 1 }

</bundles_post_ra>
